<compile_context>
chip_gen: v5e
topology: v5e:2x2
jax: 0.10.0
libtpu: 0.0.40
codegen_flags: <defaults>
</compile_context>

<pallas_src>
import math
import functools

import jax
import jax.numpy as jnp
from jax.experimental import pallas as pl
from jax.experimental.pallas import tpu as pltpu


def _same_pad(k=1, dil=1):
    return math.ceil(dil * (k - 1))


def _pad_lr(k, r, casual):
    if casual:
        return _same_pad(k, r), 0
    p = _same_pad(k, r)
    if p % 2 == 1:
        return p // 2 + 1, p // 2
    return p // 2, p // 2


def _round_up(x, m):
    return ((x + m - 1) // m) * m


def _resblock_kernel(x_ref, w1_ref, wk_ref, w2_ref, aff_ref, o_ref, hp_ref,
                     *, d, t, k, r, bblk, pad_l, store_col, t_pad, eps, cdt):
    aff = aff_ref[...].astype(jnp.float32)        # (4d, 2): col 0 = gamma, col 1 = beta
    g1, b1 = aff[0:2 * d, 0:1], aff[0:2 * d, 1:2]
    g2, b2 = aff[2 * d:3 * d, 0:1], aff[2 * d:3 * d, 1:2]
    g3, b3 = aff[3 * d:4 * d, 0:1], aff[3 * d:4 * d, 1:2]

    w1 = w1_ref[...]          # (d, 2d)   bf16
    wk = wk_ref[...]          # (d, k*d)  bf16
    w2 = w2_ref[...]          # (2d, d)   bf16

    inv_t = 1.0 / t
    tap0 = store_col - pad_l              # leftmost dilated-conv tap column
    rz = t_pad - (store_col + t)          # width of the right zero-pad region

    def norm_relu(v, g, bta):
        # InstanceNorm1d (biased variance, eps, affine) in one pass, apply folded
        # to 2 elementwise ops (v*A + B), then ReLU.
        mu = jnp.sum(v, axis=-1, keepdims=True) * inv_t
        ex2 = jnp.sum(v * v, axis=-1, keepdims=True) * inv_t
        var = jnp.maximum(ex2 - mu * mu, 0.0)
        a = g * jax.lax.rsqrt(var + eps)
        bb = bta - mu * a
        return jnp.maximum(v * a + bb, 0.0)

    # Static (unrolled) loop over the batch block: the per-element chains are
    # independent (each has its own scratch slab), so the LLO scheduler can
    # overlap element b's VPU norm work with element b+1's MXU matmuls.
    for b in range(bblk):
        # --- layernorm1 -> relu1 -> conv1x1_1 (2d -> d) ---
        h = norm_relu(x_ref[b].astype(jnp.float32), g1, b1)
        h = jnp.dot(w1, h.astype(cdt),
                    preferred_element_type=jnp.float32)            # (d, T) f32

        # --- layernorm2 -> relu2 ---
        h = norm_relu(h, g2, b2)

        # --- ConstantPad1d + dilated conv1xk (bias=False), fused into one matmul.
        # Interior stored at a lane-aligned column (store_col % 128 == 0) so the
        # big (d, T) writeback is unmasked; only the small pad regions are zeroed
        # (scratch is uninitialized and may be per-core when the grid is sharded).
        if store_col > 0:
            hp_ref[b, :, 0:store_col] = jnp.zeros((d, store_col), cdt)
        if rz > 0:
            hp_ref[b, :, store_col + t:t_pad] = jnp.zeros((d, rz), cdt)
        hp_ref[b, :, store_col:store_col + t] = h.astype(cdt)

        stacked = jnp.concatenate(
            [hp_ref[b, :, tap0 + j * r: tap0 + j * r + t] for j in range(k)],
            axis=0)                                                # (k*d, T) bf16
        h = jnp.dot(wk, stacked,
                    preferred_element_type=jnp.float32)            # (d, T) f32

        # --- layernorm3 -> relu3 -> conv1x1_2 (d -> 2d) ---
        h = norm_relu(h, g3, b3)
        h = jnp.dot(w2, h.astype(cdt),
                    preferred_element_type=jnp.float32)            # (2d, T) f32

        # --- residual: re-read x from the resident input block ---
        o_ref[b] = (h + x_ref[b].astype(jnp.float32)).astype(o_ref.dtype)


def _vmem_cap_bytes():
    # Generation-aware budget: ~85% of physical per-core VMEM
    # (v5e/v6e: 128 MiB -> ~108 MiB; v7x: 64 MiB -> ~54 MiB). Conservative
    # fallback if the query is unavailable.
    try:
        return int(0.85 * int(pltpu.get_tpu_info().vmem_capacity_bytes))
    except Exception:
        return 64 * 2 ** 20


def _vmem_estimate(bblk, d, t, t_pad, k):
    blk = bblk * 2 * d * t * 4                                    # one (bblk,2d,T) f32 block
    w_bytes = (d * 2 * d + d * k * d + 2 * d * d) * 2 + (4 * d * 2) * 4
    scratch = bblk * d * t_pad * 2                                # bf16 padded scratch
    temps = bblk * 8 * d * t * 4                                  # live f32 temporaries
    return 4 * blk + 2 * w_bytes + scratch + temps


def resblock_forward(x, params, *, d, k=3, r=1, casual=False,
                     compute_dtype=jnp.bfloat16, batch_block=None):
    """x: (N, 2d, T) float32.  params: PyTorch-layout weights (see make_params)."""
    n, c, t = x.shape
    assert c == 2 * d

    pad_l, pad_r = _pad_lr(k, r, casual)
    store_col = _round_up(pad_l, 128) if pad_l > 0 else 0   # lane-aligned interior start
    t_pad = _round_up(store_col + t + pad_r, 128)           # lane-aligned scratch width

    cap = _vmem_cap_bytes()
    if batch_block is None:
        # Largest divisor of n that keeps >= 2 grid steps (double-buffering /
        # dual-TC on v7x) and fits comfortably within the VMEM budget.
        batch_block = 1
        for b in range(1, n + 1):
            if n % b:
                continue
            if (n // b >= 2 or n == 1) and 2 * _vmem_estimate(b, d, t, t_pad, k) <= cap:
                batch_block = b
    assert n % batch_block == 0, "batch_block must divide N"
    bblk = batch_block

    # MXU operands in bf16 (f32 accumulate); everything else stays f32.
    w1 = params["w1"].astype(compute_dtype)                           # (d, 2d)
    # PyTorch Conv1d weight (d_out, d_in, k) -> (d_out, k*d_in), tap-major cols,
    # matching the row order of the stacked shifted activations in the kernel.
    wk = jnp.transpose(params["wk"], (0, 2, 1)).reshape(d, k * d)
    wk = wk.astype(compute_dtype)                                     # (d, k*d)
    w2 = params["w2"].astype(compute_dtype)                           # (2d, d)

    # Pack the six (C, 1) InstanceNorm affine params into one (4d, 2) array.
    gam = jnp.concatenate([params["g1"], params["g2"], params["g3"]], axis=0)
    bet = jnp.concatenate([params["b1"], params["b2"], params["b3"]], axis=0)
    aff = jnp.concatenate([gam, bet], axis=1).astype(jnp.float32)     # (4d, 2)

    kern = functools.partial(_resblock_kernel, d=d, t=t, k=k, r=r, bblk=bblk,
                             pad_l=pad_l, store_col=store_col, t_pad=t_pad,
                             eps=1e-5, cdt=compute_dtype)

    def full(shape):
        return pl.BlockSpec(shape, lambda i, s=len(shape): (0,) * s)

    # Advisory cost hint for XLA scheduling around the custom call.
    flops = 2 * n * t * d * d * (4 + k)
    bytes_accessed = 2 * x.size * 4 + (w1.size + wk.size + w2.size) * 2 + aff.size * 4
    cost = pl.CostEstimate(flops=flops, transcendentals=4 * n * d,
                           bytes_accessed=bytes_accessed)

    vmem_limit = int(min(cap, max(16 * 2 ** 20,
                                  2 * _vmem_estimate(bblk, d, t, t_pad, k))))

    return pl.pallas_call(
        kern,
        out_shape=jax.ShapeDtypeStruct((n, 2 * d, t), x.dtype),
        grid_spec=pltpu.PrefetchScalarGridSpec(
            num_scalar_prefetch=0,
            grid=(n // bblk,),
            in_specs=[
                pl.BlockSpec((bblk, 2 * d, t), lambda i: (i, 0, 0)),  # x batch-block
                full((d, 2 * d)),       # conv1x1_1 weight
                full((d, k * d)),       # fused dilated-conv weight (tap-major cols)
                full((2 * d, d)),       # conv1x1_2 weight
                full((4 * d, 2)),       # packed InstanceNorm gammas / betas
            ],
            out_specs=pl.BlockSpec((bblk, 2 * d, t), lambda i: (i, 0, 0)),
            scratch_shapes=[pltpu.VMEM((bblk, d, t_pad), compute_dtype)],
        ),
        compiler_params=pltpu.CompilerParams(
            dimension_semantics=("parallel",),
            vmem_limit_bytes=vmem_limit),
        cost_estimate=cost,
    )(x, w1, wk, w2, aff)


def make_params(key, d, k):
    """Weights in PyTorch layouts (1x1 conv weights with the trailing k=1 squeezed)."""
    ks = jax.random.split(key, 9)
    s = 0.1
    return dict(
        w1=s * jax.random.normal(ks[0], (d, 2 * d), jnp.float32),   # Conv1d(2d, d, 1)
        wk=s * jax.random.normal(ks[1], (d, d, k), jnp.float32),    # Conv1d(d, d, k, dil=r)
        w2=s * jax.random.normal(ks[2], (2 * d, d), jnp.float32),   # Conv1d(d, 2d, 1)
        g1=1.0 + s * jax.random.normal(ks[3], (2 * d, 1), jnp.float32),
        b1=s * jax.random.normal(ks[4], (2 * d, 1), jnp.float32),
        g2=1.0 + s * jax.random.normal(ks[5], (d, 1), jnp.float32),
        b2=s * jax.random.normal(ks[6], (d, 1), jnp.float32),
        g3=1.0 + s * jax.random.normal(ks[7], (d, 1), jnp.float32),
        b3=s * jax.random.normal(ks[8], (d, 1), jnp.float32),
    )


def resblock_reference(x, params, *, d, k=3, r=1, casual=False, eps=1e-5):
    """Pure-JAX f32 reference mirroring the PyTorch module (validation only)."""
    pad_l, pad_r = _pad_lr(k, r, casual)
    n, c, t = x.shape

    def inorm(v, g, b):
        mu = jnp.mean(v, axis=-1, keepdims=True)
        var = jnp.mean((v - mu) ** 2, axis=-1, keepdims=True)
        return (v - mu) / jnp.sqrt(var + eps) * g[None] + b[None]

    h = jnp.maximum(inorm(x, params["g1"], params["b1"]), 0.0)
    h = jnp.einsum("oc,nct->not", params["w1"], h)
    h = jnp.maximum(inorm(h, params["g2"], params["b2"]), 0.0)
    hp = jnp.pad(h, ((0, 0), (0, 0), (pad_l, pad_r)))
    acc = sum(jnp.einsum("oc,nct->not", params["wk"][:, :, j],
                         hp[:, :, j * r:j * r + t]) for j in range(k))
    h = jnp.maximum(inorm(acc, params["g3"], params["b3"]), 0.0)
    h = jnp.einsum("oc,nct->not", params["w2"], h)
    return h + x


if __name__ == "__main__":
    # Small but layout-friendly shapes: d=16 (full bf16 sublane tiles), channels=2d=32,
    # T=128 (lane-dense blocks), batch N=4 (exercises the B=2-per-step batched path
    # with a 2-long parallel grid).
    N, D, T, K, R = 4, 16, 128, 3, 1
    key = jax.random.PRNGKey(0)
    kx, kp = jax.random.split(key)

    x = jax.random.normal(kx, (N, 2 * D, T), jnp.float32)
    params = make_params(kp, D, K)

    out = resblock_forward(x, params, d=D, k=K, r=R, casual=False)
    jax.block_until_ready(out)
    assert out.shape == (N, 2 * D, T)

    ref = resblock_reference(x, params, d=D, k=K, r=R, casual=False)
    max_err = float(jnp.max(jnp.abs(out - ref)))
    assert math.isfinite(max_err) and max_err < 5e-2, f"max abs err {max_err}"
    print("KERNEL_OK")
</pallas_src>

<mosaic_0001>
module attributes {stable_mosaic.version = 11 : i64} {
  func.func @_resblock_kernel(%arg0: i32, %arg1: memref<2x32x128xf32, #tpu.memory_space<vmem>>, %arg2: memref<16x32xbf16, #tpu.memory_space<vmem>>, %arg3: memref<16x48xbf16, #tpu.memory_space<vmem>>, %arg4: memref<32x16xbf16, #tpu.memory_space<vmem>>, %arg5: memref<64x2xf32, #tpu.memory_space<vmem>>, %arg6: memref<2x32x128xf32, #tpu.memory_space<vmem>>, %arg7: memref<2x16x384xbf16, #tpu.memory_space<vmem>>) attributes {dimension_semantics = [#tpu.dimension_semantics<parallel>], iteration_bounds = array<i64: 2>, scalar_prefetch = 0 : i64, scratch_operands = 1 : i64, tpu.core_type = #tpu.core_type<tc>, window_params = [{transform_indices = @transform_0, window_bounds = array<i64: 2, 32, 128>}, {pipeline_mode = #tpu.pipeline_mode<synchronous>, transform_indices = @transform_1, window_bounds = array<i64: 16, 32>}, {pipeline_mode = #tpu.pipeline_mode<synchronous>, transform_indices = @transform_2, window_bounds = array<i64: 16, 48>}, {pipeline_mode = #tpu.pipeline_mode<synchronous>, transform_indices = @transform_3, window_bounds = array<i64: 32, 16>}, {pipeline_mode = #tpu.pipeline_mode<synchronous>, transform_indices = @transform_4, window_bounds = array<i64: 64, 2>}, {transform_indices = @transform_5, window_bounds = array<i64: 2, 32, 128>}]} {
    %c0 = arith.constant 0 : index
    %c0_0 = arith.constant 0 : index
    %0 = vector.load %arg5[%c0, %c0_0] : memref<64x2xf32, #tpu.memory_space<vmem>>, vector<64x2xf32>
    %1 = vector.extract_strided_slice %0 {offsets = [0, 0], sizes = [32, 1], strides = [1, 1]} : vector<64x2xf32> to vector<32x1xf32>
    %2 = vector.extract_strided_slice %0 {offsets = [0, 1], sizes = [32, 1], strides = [1, 1]} : vector<64x2xf32> to vector<32x1xf32>
    %3 = vector.extract_strided_slice %0 {offsets = [32, 0], sizes = [16, 1], strides = [1, 1]} : vector<64x2xf32> to vector<16x1xf32>
    %4 = vector.extract_strided_slice %0 {offsets = [32, 1], sizes = [16, 1], strides = [1, 1]} : vector<64x2xf32> to vector<16x1xf32>
    %5 = vector.extract_strided_slice %0 {offsets = [48, 0], sizes = [16, 1], strides = [1, 1]} : vector<64x2xf32> to vector<16x1xf32>
    %6 = vector.extract_strided_slice %0 {offsets = [48, 1], sizes = [16, 1], strides = [1, 1]} : vector<64x2xf32> to vector<16x1xf32>
    %c0_1 = arith.constant 0 : index
    %c0_2 = arith.constant 0 : index
    %7 = vector.load %arg2[%c0_1, %c0_2] : memref<16x32xbf16, #tpu.memory_space<vmem>>, vector<16x32xbf16>
    %c0_3 = arith.constant 0 : index
    %c0_4 = arith.constant 0 : index
    %8 = vector.load %arg3[%c0_3, %c0_4] : memref<16x48xbf16, #tpu.memory_space<vmem>>, vector<16x48xbf16>
    %c0_5 = arith.constant 0 : index
    %c0_6 = arith.constant 0 : index
    %9 = vector.load %arg4[%c0_5, %c0_6] : memref<32x16xbf16, #tpu.memory_space<vmem>>, vector<32x16xbf16>
    %c0_7 = arith.constant 0 : index
    %c0_8 = arith.constant 0 : index
    %c0_9 = arith.constant 0 : index
    %10 = vector.load %arg1[%c0_7, %c0_8, %c0_9] : memref<2x32x128xf32, #tpu.memory_space<vmem>>, vector<1x32x128xf32>
    %11 = vector.shape_cast %10 : vector<1x32x128xf32> to vector<32x128xf32>
    %cst = arith.constant dense<0.000000e+00> : vector<32xf32>
    %12 = vector.multi_reduction <add>, %11, %cst [1] : vector<32x128xf32> to vector<32xf32>
    %13 = vector.shape_cast %12 : vector<32xf32> to vector<32x1xf32>
    %cst_10 = arith.constant 7.812500e-03 : f32
    %14 = vector.broadcast %cst_10 : f32 to vector<32x1xf32>
    %15 = arith.mulf %13, %14 : vector<32x1xf32>
    %16 = arith.mulf %11, %11 : vector<32x128xf32>
    %cst_11 = arith.constant dense<0.000000e+00> : vector<32xf32>
    %17 = vector.multi_reduction <add>, %16, %cst_11 [1] : vector<32x128xf32> to vector<32xf32>
    %18 = vector.shape_cast %17 : vector<32xf32> to vector<32x1xf32>
    %cst_12 = arith.constant 7.812500e-03 : f32
    %19 = vector.broadcast %cst_12 : f32 to vector<32x1xf32>
    %20 = arith.mulf %18, %19 : vector<32x1xf32>
    %21 = arith.mulf %15, %15 : vector<32x1xf32>
    %22 = arith.subf %20, %21 : vector<32x1xf32>
    %cst_13 = arith.constant 0.000000e+00 : f32
    %23 = vector.broadcast %cst_13 : f32 to vector<32x1xf32>
    %24 = arith.maximumf %22, %23 : vector<32x1xf32>
    %cst_14 = arith.constant 9.99999974E-6 : f32
    %25 = vector.broadcast %cst_14 : f32 to vector<32x1xf32>
    %26 = arith.addf %24, %25 : vector<32x1xf32>
    %27 = math.rsqrt %26 : vector<32x1xf32>
    %28 = arith.mulf %1, %27 : vector<32x1xf32>
    %29 = arith.mulf %15, %28 : vector<32x1xf32>
    %30 = arith.subf %2, %29 : vector<32x1xf32>
    %31 = vector.broadcast %28 : vector<32x1xf32> to vector<32x128xf32>
    %32 = arith.mulf %11, %31 : vector<32x128xf32>
    %33 = vector.broadcast %30 : vector<32x1xf32> to vector<32x128xf32>
    %34 = arith.addf %32, %33 : vector<32x128xf32>
    %cst_15 = arith.constant 0.000000e+00 : f32
    %35 = vector.broadcast %cst_15 : f32 to vector<32x128xf32>
    %36 = arith.maximumf %34, %35 : vector<32x128xf32>
    %37 = arith.truncf %36 : vector<32x128xf32> to vector<32x128xbf16>
    %cst_16 = arith.constant dense<0.000000e+00> : vector<16x128xf32>
    %38 = tpu.matmul %7, %37, %cst_16 {dimension_numbers = #tpu.dot_dimension_numbers<[1], [0], [0], [1], [0, 0, 1, 1], [], []>} : vector<16x32xbf16>, vector<32x128xbf16>, vector<16x128xf32> -> vector<16x128xf32>
    %cst_17 = arith.constant dense<0.000000e+00> : vector<16xf32>
    %39 = vector.multi_reduction <add>, %38, %cst_17 [1] : vector<16x128xf32> to vector<16xf32>
    %40 = vector.shape_cast %39 : vector<16xf32> to vector<16x1xf32>
    %cst_18 = arith.constant 7.812500e-03 : f32
    %41 = vector.broadcast %cst_18 : f32 to vector<16x1xf32>
    %42 = arith.mulf %40, %41 : vector<16x1xf32>
    %43 = arith.mulf %38, %38 : vector<16x128xf32>
    %cst_19 = arith.constant dense<0.000000e+00> : vector<16xf32>
    %44 = vector.multi_reduction <add>, %43, %cst_19 [1] : vector<16x128xf32> to vector<16xf32>
    %45 = vector.shape_cast %44 : vector<16xf32> to vector<16x1xf32>
    %cst_20 = arith.constant 7.812500e-03 : f32
    %46 = vector.broadcast %cst_20 : f32 to vector<16x1xf32>
    %47 = arith.mulf %45, %46 : vector<16x1xf32>
    %48 = arith.mulf %42, %42 : vector<16x1xf32>
    %49 = arith.subf %47, %48 : vector<16x1xf32>
    %cst_21 = arith.constant 0.000000e+00 : f32
    %50 = vector.broadcast %cst_21 : f32 to vector<16x1xf32>
    %51 = arith.maximumf %49, %50 : vector<16x1xf32>
    %cst_22 = arith.constant 9.99999974E-6 : f32
    %52 = vector.broadcast %cst_22 : f32 to vector<16x1xf32>
    %53 = arith.addf %51, %52 : vector<16x1xf32>
    %54 = math.rsqrt %53 : vector<16x1xf32>
    %55 = arith.mulf %3, %54 : vector<16x1xf32>
    %56 = arith.mulf %42, %55 : vector<16x1xf32>
    %57 = arith.subf %4, %56 : vector<16x1xf32>
    %58 = vector.broadcast %55 : vector<16x1xf32> to vector<16x128xf32>
    %59 = arith.mulf %38, %58 : vector<16x128xf32>
    %60 = vector.broadcast %57 : vector<16x1xf32> to vector<16x128xf32>
    %61 = arith.addf %59, %60 : vector<16x128xf32>
    %cst_23 = arith.constant 0.000000e+00 : f32
    %62 = vector.broadcast %cst_23 : f32 to vector<16x128xf32>
    %63 = arith.maximumf %61, %62 : vector<16x128xf32>
    %cst_24 = arith.constant 0.000000e+00 : bf16
    %64 = vector.broadcast %cst_24 : bf16 to vector<16x128xbf16>
    %c0_25 = arith.constant 0 : index
    %c0_26 = arith.constant 0 : index
    %c0_27 = arith.constant 0 : index
    %65 = vector.load %arg7[%c0_25, %c0_26, %c0_27] : memref<2x16x384xbf16, #tpu.memory_space<vmem>>, vector<1x16x128xbf16>
    %66 = vector.shape_cast %65 : vector<1x16x128xbf16> to vector<16x128xbf16>
    %67 = vector.shape_cast %64 : vector<16x128xbf16> to vector<1x16x128xbf16>
    tpu.vector_store %arg7[%c0_25, %c0_26, %c0_27], %67 {strides = array<i32>} : memref<2x16x384xbf16, #tpu.memory_space<vmem>>, vector<1x16x128xbf16>,
    %cst_28 = arith.constant 0.000000e+00 : bf16
    %68 = vector.broadcast %cst_28 : bf16 to vector<16x128xbf16>
    %c0_29 = arith.constant 0 : index
    %c0_30 = arith.constant 0 : index
    %c256 = arith.constant 256 : index
    %69 = vector.load %arg7[%c0_29, %c0_30, %c256] : memref<2x16x384xbf16, #tpu.memory_space<vmem>>, vector<1x16x128xbf16>
    %70 = vector.shape_cast %69 : vector<1x16x128xbf16> to vector<16x128xbf16>
    %71 = vector.shape_cast %68 : vector<16x128xbf16> to vector<1x16x128xbf16>
    tpu.vector_store %arg7[%c0_29, %c0_30, %c256], %71 {strides = array<i32>} : memref<2x16x384xbf16, #tpu.memory_space<vmem>>, vector<1x16x128xbf16>,
    %72 = arith.truncf %63 : vector<16x128xf32> to vector<16x128xbf16>
    %c0_31 = arith.constant 0 : index
    %c0_32 = arith.constant 0 : index
    %c128 = arith.constant 128 : index
    %73 = vector.load %arg7[%c0_31, %c0_32, %c128] : memref<2x16x384xbf16, #tpu.memory_space<vmem>>, vector<1x16x128xbf16>
    %74 = vector.shape_cast %73 : vector<1x16x128xbf16> to vector<16x128xbf16>
    %75 = vector.shape_cast %72 : vector<16x128xbf16> to vector<1x16x128xbf16>
    tpu.vector_store %arg7[%c0_31, %c0_32, %c128], %75 {strides = array<i32>} : memref<2x16x384xbf16, #tpu.memory_space<vmem>>, vector<1x16x128xbf16>,
    %c0_33 = arith.constant 0 : index
    %c0_34 = arith.constant 0 : index
    %c127 = arith.constant 127 : index
    %76 = vector.load %arg7[%c0_33, %c0_34, %c127] : memref<2x16x384xbf16, #tpu.memory_space<vmem>>, vector<1x16x128xbf16>
    %77 = vector.shape_cast %76 : vector<1x16x128xbf16> to vector<16x128xbf16>
    %c0_35 = arith.constant 0 : index
    %c0_36 = arith.constant 0 : index
    %c128_37 = arith.constant 128 : index
    %78 = vector.load %arg7[%c0_35, %c0_36, %c128_37] : memref<2x16x384xbf16, #tpu.memory_space<vmem>>, vector<1x16x128xbf16>
    %79 = vector.shape_cast %78 : vector<1x16x128xbf16> to vector<16x128xbf16>
    %c0_38 = arith.constant 0 : index
    %c0_39 = arith.constant 0 : index
    %c129 = arith.constant 129 : index
    %80 = vector.load %arg7[%c0_38, %c0_39, %c129] : memref<2x16x384xbf16, #tpu.memory_space<vmem>>, vector<1x16x128xbf16>
    %81 = vector.shape_cast %80 : vector<1x16x128xbf16> to vector<16x128xbf16>
    %82 = tpu.concatenate %77, %79, %81 in 0 : vector<16x128xbf16>, vector<16x128xbf16>, vector<16x128xbf16> -> vector<48x128xbf16>
    %cst_40 = arith.constant dense<0.000000e+00> : vector<16x128xf32>
    %83 = tpu.matmul %8, %82, %cst_40 {dimension_numbers = #tpu.dot_dimension_numbers<[1], [0], [0], [1], [0, 0, 1, 1], [], []>} : vector<16x48xbf16>, vector<48x128xbf16>, vector<16x128xf32> -> vector<16x128xf32>
    %cst_41 = arith.constant dense<0.000000e+00> : vector<16xf32>
    %84 = vector.multi_reduction <add>, %83, %cst_41 [1] : vector<16x128xf32> to vector<16xf32>
    %85 = vector.shape_cast %84 : vector<16xf32> to vector<16x1xf32>
    %cst_42 = arith.constant 7.812500e-03 : f32
    %86 = vector.broadcast %cst_42 : f32 to vector<16x1xf32>
    %87 = arith.mulf %85, %86 : vector<16x1xf32>
    %88 = arith.mulf %83, %83 : vector<16x128xf32>
    %cst_43 = arith.constant dense<0.000000e+00> : vector<16xf32>
    %89 = vector.multi_reduction <add>, %88, %cst_43 [1] : vector<16x128xf32> to vector<16xf32>
    %90 = vector.shape_cast %89 : vector<16xf32> to vector<16x1xf32>
    %cst_44 = arith.constant 7.812500e-03 : f32
    %91 = vector.broadcast %cst_44 : f32 to vector<16x1xf32>
    %92 = arith.mulf %90, %91 : vector<16x1xf32>
    %93 = arith.mulf %87, %87 : vector<16x1xf32>
    %94 = arith.subf %92, %93 : vector<16x1xf32>
    %cst_45 = arith.constant 0.000000e+00 : f32
    %95 = vector.broadcast %cst_45 : f32 to vector<16x1xf32>
    %96 = arith.maximumf %94, %95 : vector<16x1xf32>
    %cst_46 = arith.constant 9.99999974E-6 : f32
    %97 = vector.broadcast %cst_46 : f32 to vector<16x1xf32>
    %98 = arith.addf %96, %97 : vector<16x1xf32>
    %99 = math.rsqrt %98 : vector<16x1xf32>
    %100 = arith.mulf %5, %99 : vector<16x1xf32>
    %101 = arith.mulf %87, %100 : vector<16x1xf32>
    %102 = arith.subf %6, %101 : vector<16x1xf32>
    %103 = vector.broadcast %100 : vector<16x1xf32> to vector<16x128xf32>
    %104 = arith.mulf %83, %103 : vector<16x128xf32>
    %105 = vector.broadcast %102 : vector<16x1xf32> to vector<16x128xf32>
    %106 = arith.addf %104, %105 : vector<16x128xf32>
    %cst_47 = arith.constant 0.000000e+00 : f32
    %107 = vector.broadcast %cst_47 : f32 to vector<16x128xf32>
    %108 = arith.maximumf %106, %107 : vector<16x128xf32>
    %109 = arith.truncf %108 : vector<16x128xf32> to vector<16x128xbf16>
    %cst_48 = arith.constant dense<0.000000e+00> : vector<32x128xf32>
    %110 = tpu.matmul %9, %109, %cst_48 {dimension_numbers = #tpu.dot_dimension_numbers<[1], [0], [0], [1], [0, 0, 1, 1], [], []>} : vector<32x16xbf16>, vector<16x128xbf16>, vector<32x128xf32> -> vector<32x128xf32>
    %c0_49 = arith.constant 0 : index
    %c0_50 = arith.constant 0 : index
    %c0_51 = arith.constant 0 : index
    %111 = vector.load %arg1[%c0_49, %c0_50, %c0_51] : memref<2x32x128xf32, #tpu.memory_space<vmem>>, vector<1x32x128xf32>
    %112 = vector.shape_cast %111 : vector<1x32x128xf32> to vector<32x128xf32>
    %113 = arith.addf %110, %112 : vector<32x128xf32>
    %c0_52 = arith.constant 0 : index
    %c0_53 = arith.constant 0 : index
    %c0_54 = arith.constant 0 : index
    %114 = vector.load %arg6[%c0_52, %c0_53, %c0_54] : memref<2x32x128xf32, #tpu.memory_space<vmem>>, vector<1x32x128xf32>
    %115 = vector.shape_cast %114 : vector<1x32x128xf32> to vector<32x128xf32>
    %116 = vector.shape_cast %113 : vector<32x128xf32> to vector<1x32x128xf32>
    tpu.vector_store %arg6[%c0_52, %c0_53, %c0_54], %116 {strides = array<i32>} : memref<2x32x128xf32, #tpu.memory_space<vmem>>, vector<1x32x128xf32>,
    %c1 = arith.constant 1 : index
    %c0_55 = arith.constant 0 : index
    %c0_56 = arith.constant 0 : index
    %117 = vector.load %arg1[%c1, %c0_55, %c0_56] : memref<2x32x128xf32, #tpu.memory_space<vmem>>, vector<1x32x128xf32>
    %118 = vector.shape_cast %117 : vector<1x32x128xf32> to vector<32x128xf32>
    %cst_57 = arith.constant dense<0.000000e+00> : vector<32xf32>
    %119 = vector.multi_reduction <add>, %118, %cst_57 [1] : vector<32x128xf32> to vector<32xf32>
    %120 = vector.shape_cast %119 : vector<32xf32> to vector<32x1xf32>
    %cst_58 = arith.constant 7.812500e-03 : f32
    %121 = vector.broadcast %cst_58 : f32 to vector<32x1xf32>
    %122 = arith.mulf %120, %121 : vector<32x1xf32>
    %123 = arith.mulf %118, %118 : vector<32x128xf32>
    %cst_59 = arith.constant dense<0.000000e+00> : vector<32xf32>
    %124 = vector.multi_reduction <add>, %123, %cst_59 [1] : vector<32x128xf32> to vector<32xf32>
    %125 = vector.shape_cast %124 : vector<32xf32> to vector<32x1xf32>
    %cst_60 = arith.constant 7.812500e-03 : f32
    %126 = vector.broadcast %cst_60 : f32 to vector<32x1xf32>
    %127 = arith.mulf %125, %126 : vector<32x1xf32>
    %128 = arith.mulf %122, %122 : vector<32x1xf32>
    %129 = arith.subf %127, %128 : vector<32x1xf32>
    %cst_61 = arith.constant 0.000000e+00 : f32
    %130 = vector.broadcast %cst_61 : f32 to vector<32x1xf32>
    %131 = arith.maximumf %129, %130 : vector<32x1xf32>
    %cst_62 = arith.constant 9.99999974E-6 : f32
    %132 = vector.broadcast %cst_62 : f32 to vector<32x1xf32>
    %133 = arith.addf %131, %132 : vector<32x1xf32>
    %134 = math.rsqrt %133 : vector<32x1xf32>
    %135 = arith.mulf %1, %134 : vector<32x1xf32>
    %136 = arith.mulf %122, %135 : vector<32x1xf32>
    %137 = arith.subf %2, %136 : vector<32x1xf32>
    %138 = vector.broadcast %135 : vector<32x1xf32> to vector<32x128xf32>
    %139 = arith.mulf %118, %138 : vector<32x128xf32>
    %140 = vector.broadcast %137 : vector<32x1xf32> to vector<32x128xf32>
    %141 = arith.addf %139, %140 : vector<32x128xf32>
    %cst_63 = arith.constant 0.000000e+00 : f32
    %142 = vector.broadcast %cst_63 : f32 to vector<32x128xf32>
    %143 = arith.maximumf %141, %142 : vector<32x128xf32>
    %144 = arith.truncf %143 : vector<32x128xf32> to vector<32x128xbf16>
    %cst_64 = arith.constant dense<0.000000e+00> : vector<16x128xf32>
    %145 = tpu.matmul %7, %144, %cst_64 {dimension_numbers = #tpu.dot_dimension_numbers<[1], [0], [0], [1], [0, 0, 1, 1], [], []>} : vector<16x32xbf16>, vector<32x128xbf16>, vector<16x128xf32> -> vector<16x128xf32>
    %cst_65 = arith.constant dense<0.000000e+00> : vector<16xf32>
    %146 = vector.multi_reduction <add>, %145, %cst_65 [1] : vector<16x128xf32> to vector<16xf32>
    %147 = vector.shape_cast %146 : vector<16xf32> to vector<16x1xf32>
    %cst_66 = arith.constant 7.812500e-03 : f32
    %148 = vector.broadcast %cst_66 : f32 to vector<16x1xf32>
    %149 = arith.mulf %147, %148 : vector<16x1xf32>
    %150 = arith.mulf %145, %145 : vector<16x128xf32>
    %cst_67 = arith.constant dense<0.000000e+00> : vector<16xf32>
    %151 = vector.multi_reduction <add>, %150, %cst_67 [1] : vector<16x128xf32> to vector<16xf32>
    %152 = vector.shape_cast %151 : vector<16xf32> to vector<16x1xf32>
    %cst_68 = arith.constant 7.812500e-03 : f32
    %153 = vector.broadcast %cst_68 : f32 to vector<16x1xf32>
    %154 = arith.mulf %152, %153 : vector<16x1xf32>
    %155 = arith.mulf %149, %149 : vector<16x1xf32>
    %156 = arith.subf %154, %155 : vector<16x1xf32>
    %cst_69 = arith.constant 0.000000e+00 : f32
    %157 = vector.broadcast %cst_69 : f32 to vector<16x1xf32>
    %158 = arith.maximumf %156, %157 : vector<16x1xf32>
    %cst_70 = arith.constant 9.99999974E-6 : f32
    %159 = vector.broadcast %cst_70 : f32 to vector<16x1xf32>
    %160 = arith.addf %158, %159 : vector<16x1xf32>
    %161 = math.rsqrt %160 : vector<16x1xf32>
    %162 = arith.mulf %3, %161 : vector<16x1xf32>
    %163 = arith.mulf %149, %162 : vector<16x1xf32>
    %164 = arith.subf %4, %163 : vector<16x1xf32>
    %165 = vector.broadcast %162 : vector<16x1xf32> to vector<16x128xf32>
    %166 = arith.mulf %145, %165 : vector<16x128xf32>
    %167 = vector.broadcast %164 : vector<16x1xf32> to vector<16x128xf32>
    %168 = arith.addf %166, %167 : vector<16x128xf32>
    %cst_71 = arith.constant 0.000000e+00 : f32
    %169 = vector.broadcast %cst_71 : f32 to vector<16x128xf32>
    %170 = arith.maximumf %168, %169 : vector<16x128xf32>
    %cst_72 = arith.constant 0.000000e+00 : bf16
    %171 = vector.broadcast %cst_72 : bf16 to vector<16x128xbf16>
    %c1_73 = arith.constant 1 : index
    %c0_74 = arith.constant 0 : index
    %c0_75 = arith.constant 0 : index
    %172 = vector.load %arg7[%c1_73, %c0_74, %c0_75] : memref<2x16x384xbf16, #tpu.memory_space<vmem>>, vector<1x16x128xbf16>
    %173 = vector.shape_cast %172 : vector<1x16x128xbf16> to vector<16x128xbf16>
    %174 = vector.shape_cast %171 : vector<16x128xbf16> to vector<1x16x128xbf16>
    tpu.vector_store %arg7[%c1_73, %c0_74, %c0_75], %174 {strides = array<i32>} : memref<2x16x384xbf16, #tpu.memory_space<vmem>>, vector<1x16x128xbf16>,
    %cst_76 = arith.constant 0.000000e+00 : bf16
    %175 = vector.broadcast %cst_76 : bf16 to vector<16x128xbf16>
    %c1_77 = arith.constant 1 : index
    %c0_78 = arith.constant 0 : index
    %c256_79 = arith.constant 256 : index
    %176 = vector.load %arg7[%c1_77, %c0_78, %c256_79] : memref<2x16x384xbf16, #tpu.memory_space<vmem>>, vector<1x16x128xbf16>
    %177 = vector.shape_cast %176 : vector<1x16x128xbf16> to vector<16x128xbf16>
    %178 = vector.shape_cast %175 : vector<16x128xbf16> to vector<1x16x128xbf16>
    tpu.vector_store %arg7[%c1_77, %c0_78, %c256_79], %178 {strides = array<i32>} : memref<2x16x384xbf16, #tpu.memory_space<vmem>>, vector<1x16x128xbf16>,
    %179 = arith.truncf %170 : vector<16x128xf32> to vector<16x128xbf16>
    %c1_80 = arith.constant 1 : index
    %c0_81 = arith.constant 0 : index
    %c128_82 = arith.constant 128 : index
    %180 = vector.load %arg7[%c1_80, %c0_81, %c128_82] : memref<2x16x384xbf16, #tpu.memory_space<vmem>>, vector<1x16x128xbf16>
    %181 = vector.shape_cast %180 : vector<1x16x128xbf16> to vector<16x128xbf16>
    %182 = vector.shape_cast %179 : vector<16x128xbf16> to vector<1x16x128xbf16>
    tpu.vector_store %arg7[%c1_80, %c0_81, %c128_82], %182 {strides = array<i32>} : memref<2x16x384xbf16, #tpu.memory_space<vmem>>, vector<1x16x128xbf16>,
    %c1_83 = arith.constant 1 : index
    %c0_84 = arith.constant 0 : index
    %c127_85 = arith.constant 127 : index
    %183 = vector.load %arg7[%c1_83, %c0_84, %c127_85] : memref<2x16x384xbf16, #tpu.memory_space<vmem>>, vector<1x16x128xbf16>
    %184 = vector.shape_cast %183 : vector<1x16x128xbf16> to vector<16x128xbf16>
    %c1_86 = arith.constant 1 : index
    %c0_87 = arith.constant 0 : index
    %c128_88 = arith.constant 128 : index
    %185 = vector.load %arg7[%c1_86, %c0_87, %c128_88] : memref<2x16x384xbf16, #tpu.memory_space<vmem>>, vector<1x16x128xbf16>
    %186 = vector.shape_cast %185 : vector<1x16x128xbf16> to vector<16x128xbf16>
    %c1_89 = arith.constant 1 : index
    %c0_90 = arith.constant 0 : index
    %c129_91 = arith.constant 129 : index
    %187 = vector.load %arg7[%c1_89, %c0_90, %c129_91] : memref<2x16x384xbf16, #tpu.memory_space<vmem>>, vector<1x16x128xbf16>
    %188 = vector.shape_cast %187 : vector<1x16x128xbf16> to vector<16x128xbf16>
    %189 = tpu.concatenate %184, %186, %188 in 0 : vector<16x128xbf16>, vector<16x128xbf16>, vector<16x128xbf16> -> vector<48x128xbf16>
    %cst_92 = arith.constant dense<0.000000e+00> : vector<16x128xf32>
    %190 = tpu.matmul %8, %189, %cst_92 {dimension_numbers = #tpu.dot_dimension_numbers<[1], [0], [0], [1], [0, 0, 1, 1], [], []>} : vector<16x48xbf16>, vector<48x128xbf16>, vector<16x128xf32> -> vector<16x128xf32>
    %cst_93 = arith.constant dense<0.000000e+00> : vector<16xf32>
    %191 = vector.multi_reduction <add>, %190, %cst_93 [1] : vector<16x128xf32> to vector<16xf32>
    %192 = vector.shape_cast %191 : vector<16xf32> to vector<16x1xf32>
    %cst_94 = arith.constant 7.812500e-03 : f32
    %193 = vector.broadcast %cst_94 : f32 to vector<16x1xf32>
    %194 = arith.mulf %192, %193 : vector<16x1xf32>
    %195 = arith.mulf %190, %190 : vector<16x128xf32>
    %cst_95 = arith.constant dense<0.000000e+00> : vector<16xf32>
    %196 = vector.multi_reduction <add>, %195, %cst_95 [1] : vector<16x128xf32> to vector<16xf32>
    %197 = vector.shape_cast %196 : vector<16xf32> to vector<16x1xf32>
    %cst_96 = arith.constant 7.812500e-03 : f32
    %198 = vector.broadcast %cst_96 : f32 to vector<16x1xf32>
    %199 = arith.mulf %197, %198 : vector<16x1xf32>
    %200 = arith.mulf %194, %194 : vector<16x1xf32>
    %201 = arith.subf %199, %200 : vector<16x1xf32>
    %cst_97 = arith.constant 0.000000e+00 : f32
    %202 = vector.broadcast %cst_97 : f32 to vector<16x1xf32>
    %203 = arith.maximumf %201, %202 : vector<16x1xf32>
    %cst_98 = arith.constant 9.99999974E-6 : f32
    %204 = vector.broadcast %cst_98 : f32 to vector<16x1xf32>
    %205 = arith.addf %203, %204 : vector<16x1xf32>
    %206 = math.rsqrt %205 : vector<16x1xf32>
    %207 = arith.mulf %5, %206 : vector<16x1xf32>
    %208 = arith.mulf %194, %207 : vector<16x1xf32>
    %209 = arith.subf %6, %208 : vector<16x1xf32>
    %210 = vector.broadcast %207 : vector<16x1xf32> to vector<16x128xf32>
    %211 = arith.mulf %190, %210 : vector<16x128xf32>
    %212 = vector.broadcast %209 : vector<16x1xf32> to vector<16x128xf32>
    %213 = arith.addf %211, %212 : vector<16x128xf32>
    %cst_99 = arith.constant 0.000000e+00 : f32
    %214 = vector.broadcast %cst_99 : f32 to vector<16x128xf32>
    %215 = arith.maximumf %213, %214 : vector<16x128xf32>
    %216 = arith.truncf %215 : vector<16x128xf32> to vector<16x128xbf16>
    %cst_100 = arith.constant dense<0.000000e+00> : vector<32x128xf32>
    %217 = tpu.matmul %9, %216, %cst_100 {dimension_numbers = #tpu.dot_dimension_numbers<[1], [0], [0], [1], [0, 0, 1, 1], [], []>} : vector<32x16xbf16>, vector<16x128xbf16>, vector<32x128xf32> -> vector<32x128xf32>
    %c1_101 = arith.constant 1 : index
    %c0_102 = arith.constant 0 : index
    %c0_103 = arith.constant 0 : index
    %218 = vector.load %arg1[%c1_101, %c0_102, %c0_103] : memref<2x32x128xf32, #tpu.memory_space<vmem>>, vector<1x32x128xf32>
    %219 = vector.shape_cast %218 : vector<1x32x128xf32> to vector<32x128xf32>
    %220 = arith.addf %217, %219 : vector<32x128xf32>
    %c1_104 = arith.constant 1 : index
    %c0_105 = arith.constant 0 : index
    %c0_106 = arith.constant 0 : index
    %221 = vector.load %arg6[%c1_104, %c0_105, %c0_106] : memref<2x32x128xf32, #tpu.memory_space<vmem>>, vector<1x32x128xf32>
    %222 = vector.shape_cast %221 : vector<1x32x128xf32> to vector<32x128xf32>
    %223 = vector.shape_cast %220 : vector<32x128xf32> to vector<1x32x128xf32>
    tpu.vector_store %arg6[%c1_104, %c0_105, %c0_106], %223 {strides = array<i32>} : memref<2x32x128xf32, #tpu.memory_space<vmem>>, vector<1x32x128xf32>,
    return
  }
  func.func @transform_0(%arg0: i32) -> (i32, i32, i32) {
    %c0_i32 = arith.constant 0 : i32
    %c0_i32_0 = arith.constant 0 : i32
    %c0_i32_1 = arith.constant 0 : i32
    return %arg0, %c0_i32, %c0_i32_0 : i32, i32, i32
  }
  func.func @transform_1(%arg0: i32) -> (i32, i32) {
    %c0_i32 = arith.constant 0 : i32
    %c0_i32_0 = arith.constant 0 : i32
    %c0_i32_1 = arith.constant 0 : i32
    return %c0_i32, %c0_i32_0 : i32, i32
  }
  func.func @transform_2(%arg0: i32) -> (i32, i32) {
    %c0_i32 = arith.constant 0 : i32
    %c0_i32_0 = arith.constant 0 : i32
    %c0_i32_1 = arith.constant 0 : i32
    return %c0_i32, %c0_i32_0 : i32, i32
  }
  func.func @transform_3(%arg0: i32) -> (i32, i32) {
    %c0_i32 = arith.constant 0 : i32
    %c0_i32_0 = arith.constant 0 : i32
    %c0_i32_1 = arith.constant 0 : i32
    return %c0_i32, %c0_i32_0 : i32, i32
  }
  func.func @transform_4(%arg0: i32) -> (i32, i32) {
    %c0_i32 = arith.constant 0 : i32
    %c0_i32_0 = arith.constant 0 : i32
    %c0_i32_1 = arith.constant 0 : i32
    return %c0_i32, %c0_i32_0 : i32, i32
  }
  func.func @transform_5(%arg0: i32) -> (i32, i32, i32) {
    %c0_i32 = arith.constant 0 : i32
    %c0_i32_0 = arith.constant 0 : i32
    %c0_i32_1 = arith.constant 0 : i32
    return %arg0, %c0_i32, %c0_i32_0 : i32, i32, i32
  }
}

</mosaic_0001>

<bundles_post_ra>
// kernel: tpu_custom_call.1
= control target key start
LH: loop header
LB: loop body
LE: loop exit
PB: predicated region body
PF: predicated region fallthrough
CT: control target
= control target key end

     0   :  { %10 = vsyncpa [#allocation4], 0  ;;  %s2099_s0 = inlined_call_operand.hbm [shape: f32[4,32,128], index: 0, kind: input, shape index: {}]   ;;  %s2100_s1 = inlined_call_operand.vmem [shape: bf16[16,32], index: 1, kind: input, shape index: {}]   ;;  %s2101_s2 = inlined_call_operand.vmem [shape: bf16[16,48], index: 2, kind: input, shape index: {}]   ;;  %s2102_s3 = inlined_call_operand.vmem [shape: bf16[32,16], index: 3, kind: input, shape index: {}]   ;;  %s2103_s4 = inlined_call_operand.vmem [shape: f32[64,2], index: 4, kind: input, shape index: {}]   ;;  %s2104_s5 = inlined_call_operand.hbm [shape: f32[4,32,128], index: 5, kind: output, shape index: {}]  }
   0x1   :  { %12 = vsyncpa [#allocation4 + $0x1], 0 }
   0x2   :  { %13 = vsyncpa [#allocation5], 0 }
   0x3   :  { %15 = vsyncpa [#allocation5 + $0x1], 0  ;;  %s1641_s18 = smov 0   ;;  %s1643_s19 = smov 0  }
   0x4   :  { %s1645_s20 = smov 0   ;;  %s1647_s21 = smov 0  }
   0x5 LB: > { %s1662_s22 = sadd.s32 4294967295, %s1600_s21   ;;  %s1289_s23 = sadd.s32 4294967294, %s1600_s21   ;;  %s1600_s21 = sphi %s1647_s21, %s2114_s21   ;;  %s1596_s20 = sphi %s1645_s20, %s2113_s20   ;;  %s1592_s19 = sphi %s1643_s19, %s2112_s19   ;;  %s1588_s18 = sphi %s1641_s18, %s2111_s18  }
   0x6   : > { %s1666_s24 = sadd.s32 1, %s1600_s21   ;;  %s28_s25 = sadd.s32 1, %s1596_s20 }
   0x7   : > { %s25_s26 = ssub.s32 %s1600_s21, %s1666_s24  ;;  %p35_p0 = scmp.ne.s32.totalorder %s1596_s20, %s1592_s19 }
   0x8   : > { %p26_p1 = scmp.eq.s32.totalorder %s25_s26, 0  ;;  %p36_p2 = scmp.eq.s32.totalorder %s1600_s21, 0 }
   0x9   : > { %p41_p3 = scmp.ne.s32.totalorder %s1592_s19, %s1588_s18  ;;  %p42_p4 = scmp.eq.s32.totalorder %s1662_s22, 0 }
   0xa   : > { %s1678_s27 = scalar_select %p26_p1, %s1596_s20, %s28_s25  }
   0xb   : > { %p1680_p5 = por %p36_p2, %p35_p0  ;;  %p1684_p6 = por %p42_p4, %p41_p3 }
   0xc   : > { %p149_p7 = scmp.eq.s32.totalorder %s1662_s22, 1  ;;  %p155_p8 = scmp.eq.s32.totalorder %s1289_s23, 1 }
   0xd   : > { %p1411_p10 = scmp.lt.s32.totalorder %s1600_s21, 2  ;;  %s187_s7 = sand.u32 1, %s1596_s20  }
   0xe   : > { %p1691_p11 = por %p149_p7, %p35_p0  ;;  %p1695_p12 = por %p155_p8, %p41_p3 }
   0xf   : > { %s1382_s8 = sshll.u32 %s1600_s21, 6  ;;  %s1292_s9 = sshll.u32 %s187_s7, 6 }
  0x10   : > { %s197_s12 = scalar_lea.hbm %s2099_s0, %s1382_s8  ;;  %s191_s14 = scalar_lea.vmem [#allocation3], %s1292_s9 }
  0x11   : > { %s198_s13 = sshll.u32 %s197_s12, 4  ;;  %s200_s15 = sshll.u32 %s191_s14, 4  ;;  %s199_s13 = int_to_ptr.hbm [resolvable:$true] %s198_s13  ;;  %s201_s15 = int_to_ptr.vmem [resolvable:$true] %s200_s15 }
  0x12   : > { %p1706_p13 = pnand %p1411_p10, %p1680_p5  ;;  %p1296_p0 = scmp.ge.s32.totalorder %s1600_s21, 1 }
  0x13   : > { %p208_p1 = scmp.lt.s32.totalorder %s1600_s21, 3  ;;  %s188_s17 = scalar_lea.sflag [#allocation4], %s187_s7 }
  0x14   : > { %s1504_s23 = sshra.s32 %s199_s13, 4  ;;  %p1508_p3 = pneg %p1706_p13  ;;  %s1505_s23 = int_to_ptr.hbm [resolvable:$true] %s1504_s23 }
  0x15   : > { %s1506_s25 = scalar_lea.hbm %s1505_s23, 64  ;;  %s1511_s28 = scalar_lea.hbm %s2099_s0, 128 }
  0x16   : > { %p1507_p2 = scmp.ne.s32.totalorder %s1505_s23, %s1506_s25  ;;  %p1512_p5 = scmp.lt.s32.totalorder %s1505_s23, %s2099_s0 }
  0x17   : > { %p1513_p8 = scmp.lt.s32.totalorder %s1511_s28, %s1506_s25 }
  0x18   : > { %p1509_p4 = pnand %p1508_p3, %p1507_p2 }
  0x19   : > { %p1514_p10 = por %p1513_p8, %p1512_p5 }
  0x1a   : > { %p1510_p7 = pneg %p1509_p4 }
  0x1c   : > { %p1515_p9 = pnand %p1514_p10, %p1510_p7 }
  0x1e   : > { %1518 = shalt.err (!%p1515_p9)
}
  0x1f   : > { %s1602_s7 = smov 128   ;;  %s1603_s11 = smov 8  }
  0x20   : > { %1406 = dma.hbm_to_vmem [thread:$0]  (!%p1706_p13), %s199_s13, 1024, %s201_s15, %s188_s17, %s1602_s7, %s1602_s7, %s1603_s11  }
  0x21   : > { %p209_p2 = pnand %p1296_p0, %p208_p1 }
  0x22   : > { %s1727_s12 = sand.u32 (!%p209_p2), 1, %s1592_s19  }
  0x23   : > { %212 = sbr.rel (%p209_p2) target bundleno = 2653 (0xa5d), region = 40  ;;  %s1297_s14 = sshll.u32 (!%p209_p2), %s1727_s12, 6 }
  0x24   : > { %s215_s23 = scalar_lea.sflag (!%p209_p2), [#allocation4], %s1727_s12  ;;  %s1733_s25 = scalar_lea.vmem (!%p209_p2), [#allocation3], %s1297_s14 }
  0x28   : > { %1579 = dma.done.wait (%p1684_p6), %s215_s23, 1024  }
  0x29   : > { %1581 = vsyncadd (%p1684_p6), %s215_s23, 4294966272  ;;  %v1740_v0 = vld [vmem:[%s1733_s25 + $0x10] sm:$0xff]  ;;  %v1743_v1 = vld [vmem:[%s1733_s25] sm:$0xff]  ;;  %v1604_v28 = vmov 0   ;;  %s1605_s15 = smov 1   ;;  %vm440_vm12 = vcmask 261120  }
  0x2a   : > { %273 = vadd.xlane.f32.xlu0 %v1740_v0  ;;  %v283_v2 = vmul.f32 %v1740_v0, %v1740_v0  ;;  %269 = vadd.xlane.f32.xlu2 %v1743_v1  ;;  %v1750_v3 = vld [vmem:[%s1733_s25 + $0x18] sm:$0xff]  ;;  %v1753_v4 = vld [vmem:[%s1733_s25 + $0x8] sm:$0xff]  ;;  %v281_v6 = vmul.f32 %v1743_v1, %v1743_v1  ;;  %540 = vst [vmem:[#allocation2] sm:$0xf] %v1604_v28  ;;  %v1793_v48 = vld [vmem:[%s2103_s4 + $0x10] sm:$0xff]  ;;  %s1607_s16 = smov 126  }
  0x2b   : > { %v284_v5 = vmul.f32 %v1750_v3, %v1750_v3  ;;  %v282_v7 = vmul.f32 %v1753_v4, %v1753_v4  ;;  %1454 = vset.pattern.permute.xlu0 %v1604_v28  ;;  %1456 = vset.pattern.permute.xlu1 %v1604_v28  ;;  %541 = vst [vmem:[#allocation2 + $0xc] sm:$0xf] %v1604_v28  ;;  %v1801_v61 = vld [vmem:[%s2103_s4 + $0x18] sm:$0xff]  ;;  %s1608_s17 = smov 127   ;;  %s2048_s13 = scalar_lea.vmem [#allocation6], %s1297_s14 }
  0x2c   : > { %289 = vadd.xlane.f32.xlu1 %v283_v2  ;;  %1455 = vset.pattern.permute.xlu2 %v1604_v28  ;;  %542 = vst [vmem:[#allocation2 + $0x8] sm:$0xf] %v1604_v28  ;;  %s1398_s14 = sshll.u32 %s1662_s22, 6  ;;  %s1213_s8 = sshll.u32 %s2048_s13, 4  ;;  %s1214_s8 = int_to_ptr.vmem [resolvable:$true] %s1213_s8 }
  0x2d   : > { %543 = vst [vmem:[#allocation2 + $0x14] sm:$0xf] %v1604_v28  ;;  %s1212_s26 = scalar_lea.hbm %s2104_s5, %s1398_s14  ;;  %s1200_s9 = scalar_lea.sflag [#allocation5], %s1727_s12 }
  0x2e   : > { %1017 = vst [vmem:[#allocation2 + $0x18] sm:$0xf] %v1604_v28  ;;  %s1215_s28 = sshll.u32 %s1212_s26, 4  ;;  %s1554_s11 = scalar_lea.hbm %s2104_s5, 128  ;;  %s1216_s28 = int_to_ptr.hbm [resolvable:$true] %s1215_s28 }
  0x2f   : > { %1018 = vst [vmem:[#allocation2 + $0x24] sm:$0xf] %v1604_v28  ;;  %s1548_s10 = sshra.s32 %s1216_s28, 4  ;;  %s1549_s10 = int_to_ptr.hbm [resolvable:$true] %s1548_s10 }
  0x30   : > { %1019 = vst [vmem:[#allocation2 + $0x20] sm:$0xf] %v1604_v28  ;;  %s1550_s22 = scalar_lea.hbm %s1549_s10, 64  ;;  %p1555_p0 = scmp.lt.s32.totalorder %s1549_s10, %s2104_s5 }
  0x31   : > { %1020 = vst [vmem:[#allocation2 + $0x2c] sm:$0xf] %v1604_v28  ;;  %p1551_p6 = scmp.ne.s32.totalorder %s1549_s10, %s1550_s22  ;;  %p1556_p1 = scmp.lt.s32.totalorder %s1554_s11, %s1550_s22 }
  0x32   : > { %275 = vadd.xlane.f32.xlu0 %v1750_v3  ;;  %271 = vadd.xlane.f32.xlu2 %v1753_v4 }
  0x33   : > { %p1552_p9 = pnand %p1551_p6, %p1691_p11  ;;  %p1557_p3 = por %p1556_p1, %p1555_p0 }
  0x34   : > { %291 = vadd.xlane.f32.xlu1 %v284_v5 }
  0x35   : > { %p1553_p13 = pneg %p1552_p9 }
  0x37   : > { %p1558_p4 = pnand %p1557_p3, %p1553_p13 }
  0x3a   : > { %285 = vadd.xlane.f32.xlu0 %v281_v6 }
  0x3c   : > { %287 = vadd.xlane.f32.xlu1 %v282_v7 }
  0x9d   : > { %v274_v8 = vpop.xlane.xlu0 %273  ;;  %v270_v9 = vpop.xlane.xlu2 %269 }
  0x9e   : > { %v1763_v10 = vmul.f32 0.0078125, %v274_v8  ;;  %v1771_v23 = vmul.f32 0.0078125, %v270_v9 }
  0x9f   : > { %v290_v11 = vpop.xlane.xlu1 %289 }
  0xa0   : > { %v299_v12 = vmul.f32 %v1763_v10, %v1763_v10  ;;  %v295_v13 = vmul.f32 0.0078125, %v290_v11  ;;  %v297_v30 = vmul.f32 %v1771_v23, %v1771_v23  ;;  %v1808_v11 = vld [vmem:[%s2103_s4] sm:$0xff] }
  0xa2   : > { %v303_v14 = vsub.f32 %v295_v13, %v299_v12 }
  0xa4   : > { %v307_v15 = vmax.f32 %v303_v14, 0.0  ;;  %v1814_v14 = vld [vmem:[%s2103_s4 + $0x8] sm:$0xff] }
  0xa5   : > { %v276_v16 = vpop.xlane.xlu0 %275  ;;  %v272_v20 = vpop.xlane.xlu2 %271 }
  0xa6   : > { %v311_v17 = vadd.f32 1e-05, %v307_v15  ;;  %v1767_v18 = vmul.f32 0.0078125, %v276_v16  ;;  %v1773_v25 = vmul.f32 0.0078125, %v272_v20 }
  0xa7   : > { %v292_v19 = vpop.xlane.xlu1 %291 }
  0xa8   : > { %1472 = vrsqrt.f32 %v311_v17  ;;  %v300_v21 = vmul.f32 %v1767_v18, %v1767_v18  ;;  %v296_v22 = vmul.f32 0.0078125, %v292_v19  ;;  %v298_v32 = vmul.f32 %v1773_v25, %v1773_v25 }
  0xa9   : > { %vm339_vm1 = vweird.f32 %v311_v17 }
  0xaa   : > { %v304_v24 = vsub.f32 %v296_v22, %v300_v21  ;;  %v1606_v21 = vmov 1  }
  0xac   : > { %v308_v26 = vmax.f32 %v304_v24, 0.0 }
  0xad   : > { %v286_v27 = vpop.xlane.xlu0 %285 }
  0xae   : > { %v1473_v29 = vpop.eup %1472  ;;  %v312_v31 = vadd.f32 1e-05, %v308_v26  ;;  %v293_v33 = vmul.f32 0.0078125, %v286_v27 }
  0xaf   : > { %v334_v34 = vmul.f32 %v1473_v29, %v311_v17  ;;  %v288_v35 = vpop.xlane.xlu1 %287  ;;  %vm340_vm0 = vweird.f32 %v1473_v29 }
  0xb0   : > { %1474 = vrsqrt.f32 %v312_v31  ;;  %v301_v36 = vsub.f32 %v293_v33, %v297_v30  ;;  %v294_v37 = vmul.f32 0.0078125, %v288_v35  ;;  %vm341_vm2 = vmor %vm339_vm1, %vm340_vm0  ;;  %vm349_vm4 = vweird.f32 %v312_v31 }
  0xb1   : > { %v335_v38 = vmul.f32 %v1473_v29, %v334_v34 }
  0xb2   : > { %v305_v39 = vmax.f32 %v301_v36, 0.0  ;;  %v302_v40 = vsub.f32 %v294_v37, %v298_v32 }
  0xb3   : > { %v336_v41 = vmul.f32 0.5, %v335_v38 }
  0xb4   : > { %v309_v42 = vadd.f32 1e-05, %v305_v39  ;;  %v306_v43 = vmax.f32 %v302_v40, 0.0 }
  0xb5   : > { %v337_v44 = vsub.f32 1.5, %v336_v41 }
  0xb6   : > { %v1475_v45 = vpop.eup %1474  ;;  %1476 = vrsqrt.f32 %v309_v42  ;;  %v310_v46 = vadd.f32 1e-05, %v306_v43  ;;  %vm319_vm7 = vweird.f32 %v309_v42 }
  0xb7   : > { %v344_v47 = vmul.f32 %v1475_v45, %v312_v31  ;;  %v338_v49 = vmul.f32 %v1473_v29, %v337_v44  ;;  %vm350_vm3 = vweird.f32 %v1475_v45 }
  0xb8   : > { %1478 = vrsqrt.f32 %v310_v46  ;;  %vm351_vm5 = vmor %vm349_vm4, %vm350_vm3  ;;  %vm329_vm10 = vweird.f32 %v310_v46 }
  0xb9   : > { %v345_v50 = vmul.f32 %v1475_v45, %v344_v47  ;;  %v342_v51 = vsel %vm341_vm2, %v1473_v29, %v338_v49 }
  0xba   : > { %v355_v52 = vmul.f32 %v342_v51, %v1793_v48 }
  0xbb   : > { %v346_v53 = vmul.f32 0.5, %v345_v50 }
  0xbc   : > { %v1477_v54 = vpop.eup %1476  ;;  %v359_v55 = vmul.f32 %v355_v52, %v1763_v10 }
  0xbd   : > { %v347_v56 = vsub.f32 1.5, %v346_v53  ;;  %v314_v57 = vmul.f32 %v1477_v54, %v309_v42  ;;  %vm320_vm6 = vweird.f32 %v1477_v54 }
  0xbe   : > { %v1479_v58 = vpop.eup %1478  ;;  %369 = vrot.lane.b32.xlu2 %v359_v55, %s1605_s15  ;;  %vm321_vm9 = vmor %vm319_vm7, %vm320_vm6  ;;  %v1851_v55 = vld [vmem:[%s1733_s25 + $0x30] sm:$0xff] }
  0xbf   : > { %v315_v59 = vmul.f32 %v1477_v54, %v314_v57  ;;  %v324_v60 = vmul.f32 %v1479_v58, %v310_v46  ;;  %v348_v62 = vmul.f32 %v1475_v45, %v347_v56  ;;  %vm330_vm8 = vweird.f32 %v1479_v58  ;;  %v1855_v56 = vld [vmem:[%s1733_s25 + $0x38] sm:$0xff] }
  0xc0   : > { %vm331_vm11 = vmor %vm329_vm10, %vm330_vm8 }
  0xc1   : > { %v316_v63 = vmul.f32 0.5, %v315_v59  ;;  %v325_v2 = vmul.f32 %v1479_v58, %v324_v60  ;;  %v352_v5 = vsel %vm351_vm5, %v1475_v45, %v348_v62 }
  0xc2   : > { %v356_v6 = vmul.f32 %v352_v5, %v1801_v61 }
  0xc3   : > { %v317_v7 = vsub.f32 1.5, %v316_v63  ;;  %v326_v8 = vmul.f32 0.5, %v325_v2 }
  0xc4   : > { %v360_v9 = vmul.f32 %v356_v6, %v1767_v18 }
  0xc5   : > { %v327_v10 = vsub.f32 1.5, %v326_v8  ;;  %v318_v12 = vmul.f32 %v1477_v54, %v317_v7 }
  0xc6   : > { %371 = vrot.lane.b32.xlu0 %v360_v9, %s1605_s15 }
  0xc7   : > { %v322_v13 = vsel %vm321_vm9, %v1477_v54, %v318_v12  ;;  %v328_v15 = vmul.f32 %v1479_v58, %v327_v10 }
  0xc8   : > { %v353_v16 = vmul.f32 %v322_v13, %v1808_v11 }
  0xc9   : > { %v332_v17 = vsel %vm331_vm11, %v1479_v58, %v328_v15 }
  0xca   : > { %v357_v18 = vmul.f32 %v353_v16, %v1771_v23  ;;  %v354_v19 = vmul.f32 %v332_v17, %v1814_v14 }
  0xcc   : > { %365 = vrot.lane.b32.xlu1 %v357_v18, %s1605_s15  ;;  %v358_v20 = vmul.f32 %v354_v19, %v1773_v25 }
  0xce   : > { %393 = vperm.xlu0 %1454, %v355_v52   ;;  %367 = vrot.lane.b32.xlu2 %v358_v20, %s1605_s15  ;;  %v1836_v52 = vld [vmem:[%s2100_s1] sm:$0xff] }
  0xd4   : > { %383 = vperm.xlu1 %1456, %v353_v16  }
  0xd6   : > { %388 = vperm.xlu0 %1454, %v354_v19   ;;  %398 = vperm.xlu2 %1455, %v356_v6  }
  0xdc   : > { %1457 = vset.pattern.permute.xlu1 %v1606_v21 }
  0xde   : > { %1458 = vset.pattern.permute.xlu2 %v1606_v21 }
 0x118   : > { %v370_v22 = vpop.permute.xlu2 %369 }
 0x119   : > { %v379_v23 = vsub.f32 %v1793_v48, %v370_v22 }
 0x11b   : > { %417 = vperm.xlu1 %1457, %v379_v23  }
 0x128   : > { %v368_v24 = vpop.permute.xlu2 %367 }
 0x129   : > { %v378_v26 = vsub.f32 %v1814_v14, %v368_v24  ;;  %v1861_v24 = vld [vmem:[%s2103_s4 + $0x20] sm:$0xff] }
 0x12b   : > { %412 = vperm.xlu1 %1457, %v378_v26  }
 0x130   : > { %v399_v32 = vpop.permute.xlu2 %398 }
 0x131   : > { %v404_v36 = vmul.f32 %v399_v32, %v1750_v3 }
 0x138   : > { %v372_v25 = vpop.permute.xlu0 %371 }
 0x139   : > { %v380_v27 = vsub.f32 %v1801_v61, %v372_v25 }
 0x13b   : > { %422 = vperm.xlu2 %1458, %v380_v27  }
 0x13e   : > { %v366_v29 = vpop.permute.xlu1 %365 }
 0x13f   : > { %v377_v30 = vsub.f32 %v1808_v11, %v366_v29 }
 0x140   : > { %v394_v33 = vpop.permute.xlu0 %393 }
 0x141   : > { %v403_v35 = vmul.f32 %v394_v33, %v1740_v0  ;;  %v1868_v33 = vld [vmem:[%s2103_s4 + $0x28] sm:$0xff] }
 0x143   : > { %407 = vperm.xlu2 %1458, %v377_v30  }
 0x146   : > { %v384_v31 = vpop.permute.xlu1 %383 }
 0x147   : > { %v401_v44 = vmul.f32 %v384_v31, %v1743_v1 }
 0x148   : > { %v389_v42 = vpop.permute.xlu0 %388 }
 0x149   : > { %v402_v45 = vmul.f32 %v389_v42, %v1753_v4 }
 0x14b   : > { %1459 = vset.pattern.permute.xlu2 %v1604_v28 }
 0x18d   : > { %v418_v34 = vpop.permute.xlu1 %417 }
 0x18e   : > { %v427_v37 = vadd.f32 %v418_v34, %v403_v35 }
 0x190   : > { %v431_v40 = vmax.f32 %v427_v37, 0.0 }
 0x195   : > { %v423_v38 = vpop.permute.xlu2 %422 }
 0x196   : > { %v428_v39 = vadd.f32 %v423_v38, %v404_v36  ;;  %v769_v38 = vmul.f32 %v1855_v56, %v1855_v56 }
 0x198   : > { %v432_v41 = vmax.f32 %v428_v39, 0.0  ;;  %v768_v39 = vmul.f32 %v1851_v55, %v1851_v55 }
 0x19a   : > { %v434_v43 = vpack.c.bf16 %v432_v41, %v431_v40  ;;  %v1878_v40 = vld [vmem:[%s1733_s25 + $0x28] sm:$0xff] }
 0x19b   : > { %v767_v41 = vmul.f32 %v1878_v40, %v1878_v40 }
 0x19c   : > { %450 = vmatpush.bf16.msra.mxu0 %v434_v43 }
 0x19d   : > { %v408_v46 = vpop.permute.xlu2 %407  ;;  %v413_v47 = vpop.permute.xlu1 %412 }
 0x19e   : > { %v425_v49 = vadd.f32 %v408_v46, %v401_v44  ;;  %v426_v50 = vadd.f32 %v413_v47, %v402_v45  ;;  %v1886_v46 = vld [vmem:[%s1733_s25 + $0x20] sm:$0xff] }
 0x19f   : > { %v766_v47 = vmul.f32 %v1886_v46, %v1886_v46 }
 0x1a0   : > { %v429_v0 = vmax.f32 %v425_v49, 0.0  ;;  %v430_v51 = vmax.f32 %v426_v50, 0.0  ;;  %v1390_v50 = vld [vmem:[#allocation2 + $0x8] sm:$0xf] }
 0x1a2   : > { %v433_v3 = vpack.c.bf16 %v430_v51, %v429_v0  ;;  %v1320_v0 = vld [vmem:[#allocation2 + $0x10] sm:$0xf0] }
 0x1a4   : > { %451 = vmatpush.bf16.msra.mxu0 %v433_v3  ;;  %v1323_v3 = vor.u32 %v1390_v50, %v1320_v0 }
 0x1a7   : > { %1303 = vmatmul.msk.bf16.vlgmr.msra.gmra.mxu0 %vm440_vm12, %v1836_v52 }
 0x224   : > { %v1840_v1 = vpop.f32.mrf.mxu0 }
 0x225   : > { %458 = vadd.xlane.f32.xlu0 %v1840_v1  ;;  %v464_v4 = vmul.f32 %v1840_v1, %v1840_v1 }
 0x227   : > { %466 = vadd.xlane.f32.xlu1 %v464_v4 }
 0x22c   : > { %v1845_v53 = vpop.f32.mrf.mxu0 }
 0x22d   : > { %460 = vadd.xlane.f32.xlu2 %v1845_v53  ;;  %v465_v54 = vmul.f32 %v1845_v53, %v1845_v53 }
 0x22f   : > { %468 = vadd.xlane.f32.xlu0 %v465_v54 }
 0x237   : > { %758 = vadd.xlane.f32.xlu0 %v1851_v55 }
 0x23f   : > { %760 = vadd.xlane.f32.xlu0 %v1855_v56 }
 0x298   : > { %v459_v57 = vpop.xlane.xlu0 %458 }
 0x299   : > { %v462_v58 = vmul.f32 0.0078125, %v459_v57 }
 0x29a   : > { %v467_v59 = vpop.xlane.xlu1 %466 }
 0x29b   : > { %v472_v60 = vmul.f32 %v462_v58, %v462_v58  ;;  %v470_v62 = vmul.f32 0.0078125, %v467_v59 }
 0x29d   : > { %v474_v63 = vsub.f32 %v470_v62, %v472_v60 }
 0x29f   : > { %v476_v2 = vmax.f32 %v474_v63, 0.0 }
 0x2a0   : > { %v461_v5 = vpop.xlane.xlu2 %460 }
 0x2a1   : > { %v478_v6 = vadd.f32 1e-05, %v476_v2  ;;  %v463_v7 = vmul.f32 0.0078125, %v461_v5 }
 0x2a2   : > { %v469_v8 = vpop.xlane.xlu0 %468 }
 0x2a3   : > { %1480 = vrsqrt.f32 %v478_v6  ;;  %v473_v9 = vmul.f32 %v463_v7, %v463_v7  ;;  %v471_v10 = vmul.f32 0.0078125, %v469_v8  ;;  %vm486_vm14 = vweird.f32 %v478_v6 }
 0x2a5   : > { %v475_v12 = vsub.f32 %v471_v10, %v473_v9 }
 0x2a7   : > { %v477_v13 = vmax.f32 %v475_v12, 0.0 }
 0x2a9   : > { %v1481_v15 = vpop.eup %1480  ;;  %v479_v16 = vadd.f32 1e-05, %v477_v13 }
 0x2aa   : > { %v481_v17 = vmul.f32 %v1481_v15, %v478_v6  ;;  %vm487_vm13 = vweird.f32 %v1481_v15  ;;  %v759_v49 = vpop.xlane.xlu0 %758 }
 0x2ab   : > { %1482 = vrsqrt.f32 %v479_v16  ;;  %vm488_vm15 = vmor %vm486_vm14, %vm487_vm13  ;;  %vm496_vm1 = vweird.f32 %v479_v16  ;;  %v764_v57 = vmul.f32 0.0078125, %v759_v49 }
 0x2ac   : > { %v482_v18 = vmul.f32 %v1481_v15, %v481_v17 }
 0x2ad   : > { %v784_v59 = vmul.f32 %v764_v57, %v764_v57 }
 0x2ae   : > { %v483_v19 = vmul.f32 0.5, %v482_v18 }
 0x2b0   : > { %v484_v20 = vsub.f32 1.5, %v483_v19 }
 0x2b1   : > { %v1483_v22 = vpop.eup %1482 }
 0x2b2   : > { %v491_v23 = vmul.f32 %v1483_v22, %v479_v16  ;;  %v485_v26 = vmul.f32 %v1481_v15, %v484_v20  ;;  %vm497_vm0 = vweird.f32 %v1483_v22  ;;  %v761_v4 = vpop.xlane.xlu0 %760 }
 0x2b3   : > { %vm498_vm2 = vmor %vm496_vm1, %vm497_vm0  ;;  %v765_v54 = vmul.f32 0.0078125, %v761_v4  ;;  %vm581_vm0 = vcmask 1031168   ;;  %vm598_vm1 = vcmask 7168  }
 0x2b4   : > { %v492_v25 = vmul.f32 %v1483_v22, %v491_v23  ;;  %v489_v27 = vsel %vm488_vm15, %v1481_v15, %v485_v26 }
 0x2b5   : > { %v500_v29 = vmul.f32 %v489_v27, %v1861_v24 }
 0x2b6   : > { %v493_v30 = vmul.f32 0.5, %v492_v25 }
 0x2b7   : > { %516 = vperm.xlu0 %1454, %v500_v29   ;;  %v502_v31 = vmul.f32 %v500_v29, %v462_v58  ;;  %v785_v58 = vmul.f32 %v765_v54, %v765_v54 }
 0x2b8   : > { %v494_v32 = vsub.f32 1.5, %v493_v30 }
 0x2b9   : > { %506 = vrot.lane.b32.xlu2 %v502_v31, %s1605_s15 }
 0x2ba   : > { %v495_v34 = vmul.f32 %v1483_v22, %v494_v32 }
 0x2bc   : > { %v499_v35 = vsel %vm498_vm2, %v1483_v22, %v495_v34  ;;  %vm604_vm2 = vcmask 392192  }
 0x2bd   : > { %v501_v36 = vmul.f32 %v499_v35, %v1868_v33 }
 0x2bf   : > { %v503_v37 = vmul.f32 %v501_v36, %v463_v7  ;;  %1460 = vset.pattern.permute.xlu0 %v1606_v21 }
 0x2c1   : > { %521 = vperm.xlu2 %1459, %v501_v36   ;;  %508 = vrot.lane.b32.xlu1 %v503_v37, %s1605_s15 }
 0x2ea   : > { %776 = vadd.xlane.f32.xlu2 %v769_v38 }
 0x2eb   : > { %774 = vadd.xlane.f32.xlu1 %v768_v39 }
 0x2f2   : > { %770 = vadd.xlane.f32.xlu2 %v766_v47 }
 0x2f3   : > { %756 = vadd.xlane.f32.xlu1 %v1878_v40 }
 0x2fb   : > { %772 = vadd.xlane.f32.xlu1 %v767_v41 }
 0x313   : > { %v507_v42 = vpop.permute.xlu2 %506 }
 0x314   : > { %v512_v43 = vsub.f32 %v1861_v24, %v507_v42  ;;  %579 = vrot.lane.b32.xlu1 %v1323_v3, %s1607_s16 }
 0x316   : > { %528 = vperm.xlu0 %1460, %v512_v43  }
 0x31b   : > { %v1891_v51 = vpop.permute.xlu2 %521 }
 0x329   : > { %v517_v47 = vpop.permute.xlu0 %516 }
 0x32a   : > { %v524_v4 = vmul.f32 %v517_v47, %v1840_v1 }
 0x333   : > { %v509_v44 = vpop.permute.xlu1 %508 }
 0x334   : > { %v513_v45 = vsub.f32 %v1868_v33, %v509_v44 }
 0x336   : > { %533 = vperm.xlu0 %1460, %v513_v45  }
 0x33e   : > { %1461 = vset.pattern.permute.xlu0 %v1604_v28 }
 0x35d   : > { %v777_v60 = vpop.xlane.xlu2 %776 }
 0x35e   : > { %v775_v62 = vpop.xlane.xlu1 %774  ;;  %v781_v63 = vmul.f32 0.0078125, %v777_v60 }
 0x35f   : > { %v780_v2 = vmul.f32 0.0078125, %v775_v62 }
 0x360   : > { %754 = vadd.xlane.f32.xlu0 %v1886_v46  ;;  %v789_v5 = vsub.f32 %v781_v63, %v785_v58 }
 0x361   : > { %v788_v6 = vsub.f32 %v780_v2, %v784_v59  ;;  %v525_v2 = vmul.f32 %v1891_v51, %v1845_v53 }
 0x362   : > { %v793_v7 = vmax.f32 %v789_v5, 0.0 }
 0x363   : > { %v792_v8 = vmax.f32 %v788_v6, 0.0 }
 0x364   : > { %v797_v9 = vadd.f32 1e-05, %v793_v7 }
 0x365   : > { %v796_v10 = vadd.f32 1e-05, %v792_v8  ;;  %v771_v53 = vpop.xlane.xlu2 %770 }
 0x366   : > { %1484 = vrsqrt.f32 %v797_v9  ;;  %v757_v12 = vpop.xlane.xlu1 %756  ;;  %vm834_vm3 = vweird.f32 %v797_v9 }
 0x367   : > { %1486 = vrsqrt.f32 %v796_v10  ;;  %v763_v13 = vmul.f32 0.0078125, %v757_v12  ;;  %vm824_vm5 = vweird.f32 %v796_v10 }
 0x369   : > { %v783_v18 = vmul.f32 %v763_v13, %v763_v13 }
 0x36c   : > { %v1485_v15 = vpop.eup %1484 }
 0x36d   : > { %v1487_v16 = vpop.eup %1486  ;;  %v829_v17 = vmul.f32 %v1485_v15, %v797_v9  ;;  %vm835_vm4 = vweird.f32 %v1485_v15 }
 0x36e   : > { %v819_v19 = vmul.f32 %v1487_v16, %v796_v10  ;;  %v773_v20 = vpop.xlane.xlu1 %772  ;;  %vm825_vm6 = vweird.f32 %v1487_v16  ;;  %vm836_vm7 = vmor %vm834_vm3, %vm835_vm4 }
 0x36f   : > { %v830_v22 = vmul.f32 %v1485_v15, %v829_v17  ;;  %v779_v23 = vmul.f32 0.0078125, %v773_v20  ;;  %vm826_vm8 = vmor %vm824_vm5, %vm825_vm6  ;;  %v778_v20 = vmul.f32 0.0078125, %v771_v53 }
 0x370   : > { %v820_v26 = vmul.f32 %v1487_v16, %v819_v19 }
 0x371   : > { %v831_v25 = vmul.f32 0.5, %v830_v22  ;;  %v787_v27 = vsub.f32 %v779_v23, %v783_v18 }
 0x372   : > { %v821_v29 = vmul.f32 0.5, %v820_v26 }
 0x373   : > { %v832_v30 = vsub.f32 1.5, %v831_v25  ;;  %v791_v31 = vmax.f32 %v787_v27, 0.0 }
 0x374   : > { %v822_v32 = vsub.f32 1.5, %v821_v29 }
 0x375   : > { %v795_v34 = vadd.f32 1e-05, %v791_v31  ;;  %v833_v35 = vmul.f32 %v1485_v15, %v832_v30 }
 0x376   : > { %v823_v36 = vmul.f32 %v1487_v16, %v822_v32 }
 0x377   : > { %1488 = vrsqrt.f32 %v795_v34  ;;  %v837_v37 = vsel %vm836_vm7, %v1485_v15, %v833_v35  ;;  %vm814_vm9 = vweird.f32 %v795_v34 }
 0x378   : > { %v827_v38 = vsel %vm826_vm8, %v1487_v16, %v823_v36  ;;  %v1896_v39 = vmul.f32 %v837_v37, %v1801_v61 }
 0x379   : > { %v1899_v41 = vmul.f32 %v827_v38, %v1793_v48  ;;  %v1306_v38 = vld [vmem:[#allocation2] sm:$0xf] }
 0x37a   : > { %v845_v42 = vmul.f32 %v1896_v39, %v765_v54 }
 0x37b   : > { %v844_v43 = vmul.f32 %v1899_v41, %v764_v57 }
 0x37c   : > { %856 = vrot.lane.b32.xlu1 %v845_v42, %s1605_s15  ;;  %v1388_v42 = vld [vmem:[#allocation2 + $0x8] sm:$0xf0] }
 0x37d   : > { %v1489_v44 = vpop.eup %1488  ;;  %854 = vrot.lane.b32.xlu0 %v844_v43, %s1605_s15  ;;  %v1307_v43 = vor.u32 %v1388_v42, %v1306_v38 }
 0x37e   : > { %v809_v45 = vmul.f32 %v1489_v44, %v795_v34  ;;  %vm815_vm10 = vweird.f32 %v1489_v44 }
 0x37f   : > { %vm816_vm11 = vmor %vm814_vm9, %vm815_vm10 }
 0x380   : > { %v810_v49 = vmul.f32 %v1489_v44, %v809_v45 }
 0x382   : > { %v811_v50 = vmul.f32 0.5, %v810_v49 }
 0x384   : > { %v812_v0 = vsub.f32 1.5, %v811_v50 }
 0x386   : > { %v813_v3 = vmul.f32 %v1489_v44, %v812_v0 }
 0x388   : > { %v529_v58 = vpop.permute.xlu0 %528  ;;  %v817_v54 = vsel %vm816_vm11, %v1489_v44, %v813_v3  ;;  %v580_v44 = vpop.permute.xlu1 %579 }
 0x389   : > { %v536_v59 = vadd.f32 %v529_v58, %v524_v4  ;;  %v1907_v57 = vmul.f32 %v817_v54, %v1814_v14 }
 0x38b   : > { %v538_v60 = vmax.f32 %v536_v59, 0.0  ;;  %v843_v62 = vmul.f32 %v1907_v57, %v763_v13 }
 0x38d   : > { %v544_v63 = vpack.c.bf16 %v538_v60, %v538_v60  ;;  %852 = vrot.lane.b32.xlu1 %v843_v62, %s1605_s15 }
 0x38f   : > { %546 = vst [vmem:[#allocation2 + $0x4] sm:$0xf] %v544_v63 }
 0x396   : > { %v1318_v8 = vld [vmem:[#allocation2 + $0x4] sm:$0xf] }
 0x397   : > { %v1387_v10 = vld [vmem:[#allocation2 + $0x4] sm:$0xf] }
 0x398   : > { %v1314_v17 = vld [vmem:[#allocation2 + $0x4] sm:$0xf] }
 0x3a8   : > { %v534_v5 = vpop.permute.xlu0 %533 }
 0x3a9   : > { %v537_v6 = vadd.f32 %v534_v5, %v525_v2 }
 0x3ab   : > { %v539_v7 = vmax.f32 %v537_v6, 0.0 }
 0x3ad   : > { %v545_v1 = vpack.c.bf16 %v539_v7, %v539_v7 }
 0x3af   : > { %547 = vst [vmem:[#allocation2 + $0x10] sm:$0xf] %v545_v1 }
 0x3b6   : > { %v1391_v9 = vld [vmem:[#allocation2 + $0xc] sm:$0xf0] }
 0x3b7   : > { %v1308_v12 = vld [vmem:[#allocation2 + $0xc] sm:$0xf0]  ;;  %v1319_v15 = vor.u32 %v1391_v9, %v1318_v8 }
 0x3b8   : > { %v1311_v16 = vor.u32 %v1387_v10, %v1308_v12  ;;  %v1389_v13 = vld [vmem:[#allocation2 + $0xc] sm:$0xf0] }
 0x3b9   : > { %577 = vrot.lane.b32.xlu2 %v1319_v15, %s1607_s16  ;;  %v1315_v18 = vor.u32 %v1389_v13, %v1314_v17 }
 0x3ba   : > { %590 = vrot.lane.b32.xlu1 %v1311_v16, %s1605_s15 }
 0x3c1   : > { %567 = vrot.lane.b32.xlu2 %v1315_v18, %s1608_s17 }
 0x3d3   : > { %v755_v51 = vpop.xlane.xlu0 %754 }
 0x3d4   : > { %v762_v19 = vmul.f32 0.0078125, %v755_v51 }
 0x3d6   : > { %v782_v22 = vmul.f32 %v762_v19, %v762_v19 }
 0x3d8   : > { %v786_v23 = vsub.f32 %v778_v20, %v782_v22 }
 0x3da   : > { %v790_v26 = vmax.f32 %v786_v23, 0.0 }
 0x3dc   : > { %v794_v25 = vadd.f32 1e-05, %v790_v26 }
 0x3de   : > { %1490 = vrsqrt.f32 %v794_v25  ;;  %vm804_vm14 = vweird.f32 %v794_v25 }
 0x3e4   : > { %v1491_v27 = vpop.eup %1490 }
 0x3e5   : > { %v799_v29 = vmul.f32 %v1491_v27, %v794_v25  ;;  %vm805_vm13 = vweird.f32 %v1491_v27 }
 0x3e6   : > { %vm806_vm15 = vmor %vm804_vm14, %vm805_vm13 }
 0x3e7   : > { %v800_v30 = vmul.f32 %v1491_v27, %v799_v29 }
 0x3e9   : > { %v801_v31 = vmul.f32 0.5, %v800_v30 }
 0x3eb   : > { %v802_v32 = vsub.f32 1.5, %v801_v31 }
 0x3ed   : > { %v803_v34 = vmul.f32 %v1491_v27, %v802_v32 }
 0x3ee   : > { %v857_v3 = vpop.permute.xlu1 %856 }
 0x3ef   : > { %v807_v35 = vsel %vm806_vm15, %v1491_v27, %v803_v34  ;;  %v855_v49 = vpop.permute.xlu0 %854  ;;  %v865_v4 = vsub.f32 %v1801_v61, %v857_v3 }
 0x3f0   : > { %v838_v36 = vmul.f32 %v807_v35, %v1808_v11  ;;  %v864_v50 = vsub.f32 %v1793_v48, %v855_v49 }
 0x3f2   : > { %v842_v37 = vmul.f32 %v838_v36, %v762_v19 }
 0x3f4   : > { %850 = vrot.lane.b32.xlu2 %v842_v37, %s1605_s15 }
 0x3fc   : > { %588 = vrot.lane.b32.xlu2 %v1307_v43, %s1605_s15 }
 0x3ff   : > { %v853_v58 = vpop.permute.xlu1 %852 }
 0x400   : > { %v863_v48 = vsub.f32 %v1814_v14, %v853_v58 }
 0x413   : > { %v578_v45 = vpop.permute.xlu2 %577 }
 0x414   : > { %594 = vrot.lane.b32.xlu2 %v578_v45, %s1605_s15  ;;  %v582_v47 = vsel %vm581_vm0, %v578_v45, %v580_v44 }
 0x415   : > { %596 = vrot.lane.b32.xlu1 %v582_v47, %s1605_s15 }
 0x41b   : > { %v568_v0 = vpop.permute.xlu2 %567 }
 0x41c   : > { %592 = vrot.lane.b32.xlu0 %v568_v0, %s1605_s15  ;;  %883 = vperm.xlu2 %1459, %v1896_v39  }
 0x41d   : > { %902 = vperm.xlu1 %1457, %v864_v50  }
 0x424   : > { %878 = vperm.xlu0 %1461, %v1899_v41   ;;  %1462 = vset.pattern.permute.xlu2 %v1606_v21 }
 0x425   : > { %907 = vperm.xlu2 %1462, %v865_v4   ;;  %1463 = vset.pattern.permute.xlu1 %v1604_v28 }
 0x426   : > { %868 = vperm.xlu1 %1463, %v838_v36  }
 0x42c   : > { %873 = vperm.xlu0 %1461, %v1907_v57   ;;  %v591_v41 = vpop.permute.xlu1 %590 }
 0x42e   : > { %1464 = vset.pattern.permute.xlu1 %v1606_v21 }
 0x42f   : > { %897 = vperm.xlu1 %1464, %v863_v48  }
 0x44e   : > { %v851_v39 = vpop.permute.xlu2 %850 }
 0x44f   : > { %v862_v54 = vsub.f32 %v1808_v11, %v851_v39  ;;  %v1939_v11 = vld [vmem:[%s2101_s2] sm:$0xff] }
 0x451   : > { %892 = vperm.xlu2 %1462, %v862_v54  }
 0x456   : > { %v589_v61 = vpop.permute.xlu2 %588 }
 0x457   : > { %v599_v14 = vsel %vm598_vm1, %v589_v61, %v591_v41 }
 0x459   : > { %1465 = vset.pattern.permute.xlu2 %v1604_v28 }
 0x46e   : > { %v595_v59 = vpop.permute.xlu2 %594 }
 0x476   : > { %v884_v57 = vpop.permute.xlu2 %883 }
 0x477   : > { %v889_v6 = vmul.f32 %v1855_v56, %v884_v57 }
 0x47f   : > { %v908_v5 = vpop.permute.xlu2 %907 }
 0x480   : > { %v913_v1 = vadd.f32 %v908_v5, %v889_v6 }
 0x482   : > { %v917_v10 = vmax.f32 %v913_v1, 0.0 }
 0x487   : > { %v597_v60 = vpop.permute.xlu1 %596 }
 0x488   : > { %v600_v62 = vsel %vm598_vm1, %v595_v59, %v597_v60 }
 0x489   : > { %613 = vmatpush.bf16.msra.mxu1 %v600_v62 }
 0x48e   : > { %v593_v63 = vpop.permute.xlu0 %592 }
 0x48f   : > { %614 = vmatpush.bf16.msra.mxu1 %v593_v63  ;;  %v903_v2 = vpop.permute.xlu1 %902 }
 0x493   : > { %615 = vmatpush.bf16.msra.mxu1 %v599_v14 }
 0x496   : > { %v879_v7 = vpop.permute.xlu0 %878  ;;  %1328 = vmatmul.msk.bf16.vlgmr.msra.gmra.mxu1 %vm604_vm2, %v1939_v11 }
 0x497   : > { %v888_v8 = vmul.f32 %v1851_v55, %v879_v7 }
 0x498   : > { %v869_v15 = vpop.permute.xlu1 %868 }
 0x499   : > { %v912_v9 = vadd.f32 %v903_v2, %v888_v8  ;;  %v886_v53 = vmul.f32 %v1886_v46, %v869_v15  ;;  %v1360_v15 = vld [vmem:[#allocation2 + $0x28] sm:$0xf0] }
 0x49b   : > { %v916_v12 = vmax.f32 %v912_v9, 0.0 }
 0x49d   : > { %v919_v16 = vpack.c.bf16 %v917_v10, %v916_v12  ;;  %v1395_v12 = vld [vmem:[#allocation2 + $0x20] sm:$0xf] }
 0x49e   : > { %v874_v13 = vpop.permute.xlu0 %873 }
 0x49f   : > { %926 = vmatpush.bf16.msrb.mxu1 %v919_v16  ;;  %v887_v17 = vmul.f32 %v1878_v40, %v874_v13  ;;  %v1363_v16 = vor.u32 %v1395_v12, %v1360_v15  ;;  %v2006_v12 = vld [vmem:[%s2103_s4 + $0x30] sm:$0xff] }
 0x4a1   : > { %v898_v18 = vpop.permute.xlu1 %897 }
 0x4a2   : > { %v911_v56 = vadd.f32 %v898_v18, %v887_v17 }
 0x4a4   : > { %v915_v20 = vmax.f32 %v911_v56, 0.0 }
 0x4ab   : > { %v893_v51 = vpop.permute.xlu2 %892 }
 0x4ac   : > { %v910_v19 = vadd.f32 %v893_v51, %v886_v53 }
 0x4ae   : > { %v914_v22 = vmax.f32 %v910_v19, 0.0 }
 0x4b0   : > { %v918_v23 = vpack.c.bf16 %v915_v20, %v914_v22 }
 0x4b2   : > { %927 = vmatpush.bf16.msrb.mxu1 %v918_v23 }
 0x4b5   : > { %1343 = vmatmul.msk.bf16.vlgmr.msrb.gmra.mxu1 %vm440_vm12, %v1836_v52 }
 0x513   : > { %v1949_v55 = vpop.f32.mrf.mxu1 }
 0x51b   : > { %v1951_v26 = vpop.f32.mrf.mxu1 }
 0x532   : > { %v1953_v25 = vpop.f32.mrf.mxu1 }
 0x533   : > { %934 = vadd.xlane.f32.xlu0 %v1953_v25  ;;  %v940_v27 = vmul.f32 %v1953_v25, %v1953_v25 }
 0x535   : > { %942 = vadd.xlane.f32.xlu1 %v940_v27 }
 0x53a   : > { %v1958_v29 = vpop.f32.mrf.mxu1 }
 0x53b   : > { %936 = vadd.xlane.f32.xlu2 %v1958_v29  ;;  %v941_v30 = vmul.f32 %v1958_v29, %v1958_v29 }
 0x53d   : > { %944 = vadd.xlane.f32.xlu0 %v941_v30 }
 0x5a6   : > { %v935_v52 = vpop.xlane.xlu0 %934 }
 0x5a7   : > { %v938_v31 = vmul.f32 0.0078125, %v935_v52 }
 0x5a8   : > { %v943_v32 = vpop.xlane.xlu1 %942 }
 0x5a9   : > { %v948_v34 = vmul.f32 %v938_v31, %v938_v31  ;;  %v946_v35 = vmul.f32 0.0078125, %v943_v32 }
 0x5ab   : > { %v950_v36 = vsub.f32 %v946_v35, %v948_v34  ;;  %v1346_v35 = vld [vmem:[#allocation2 + $0x18] sm:$0xf] }
 0x5ad   : > { %v952_v37 = vmax.f32 %v950_v36, 0.0  ;;  %v1393_v36 = vld [vmem:[#allocation2 + $0x20] sm:$0xf0] }
 0x5ae   : > { %v937_v38 = vpop.xlane.xlu2 %936 }
 0x5af   : > { %v954_v42 = vadd.f32 1e-05, %v952_v37  ;;  %v939_v43 = vmul.f32 0.0078125, %v937_v38  ;;  %v1347_v37 = vor.u32 %v1393_v36, %v1346_v35 }
 0x5b0   : > { %v945_v44 = vpop.xlane.xlu0 %944 }
 0x5b1   : > { %1492 = vrsqrt.f32 %v954_v42  ;;  %v949_v45 = vmul.f32 %v939_v43, %v939_v43  ;;  %v947_v47 = vmul.f32 0.0078125, %v945_v44  ;;  %vm962_vm3 = vweird.f32 %v954_v42 }
 0x5b3   : > { %v951_v49 = vsub.f32 %v947_v47, %v949_v45  ;;  %v628_v45 = vmul.f32 %v1949_v55, %v1949_v55 }
 0x5b5   : > { %v953_v50 = vmax.f32 %v951_v49, 0.0 }
 0x5b7   : > { %v1493_v0 = vpop.eup %1492  ;;  %v955_v3 = vadd.f32 1e-05, %v953_v50 }
 0x5b8   : > { %v957_v4 = vmul.f32 %v1493_v0, %v954_v42  ;;  %vm963_vm12 = vweird.f32 %v1493_v0 }
 0x5b9   : > { %1494 = vrsqrt.f32 %v955_v3  ;;  %vm964_vm4 = vmor %vm962_vm3, %vm963_vm12  ;;  %vm972_vm6 = vweird.f32 %v955_v3 }
 0x5ba   : > { %v958_v58 = vmul.f32 %v1493_v0, %v957_v4 }
 0x5bc   : > { %v959_v48 = vmul.f32 0.5, %v958_v58 }
 0x5be   : > { %v960_v39 = vsub.f32 1.5, %v959_v48 }
 0x5bf   : > { %v1495_v54 = vpop.eup %1494 }
 0x5c0   : > { %v967_v61 = vmul.f32 %v1495_v54, %v955_v3  ;;  %v961_v41 = vmul.f32 %v1493_v0, %v960_v39  ;;  %vm973_vm5 = vweird.f32 %v1495_v54 }
 0x5c1   : > { %vm974_vm7 = vmor %vm972_vm6, %vm973_vm5 }
 0x5c2   : > { %v968_v59 = vmul.f32 %v1495_v54, %v967_v61  ;;  %v965_v60 = vsel %vm964_vm4, %v1493_v0, %v961_v41  ;;  %vm719_vm4 = vcmask 130048  }
 0x5c3   : > { %v976_v62 = vmul.f32 %v965_v60, %v1861_v24 }
 0x5c4   : > { %v969_v57 = vmul.f32 0.5, %v968_v59 }
 0x5c5   : > { %992 = vperm.xlu0 %1461, %v976_v62   ;;  %v978_v63 = vmul.f32 %v976_v62, %v938_v31 }
 0x5c6   : > { %v970_v14 = vsub.f32 1.5, %v969_v57 }
 0x5c7   : > { %982 = vrot.lane.b32.xlu2 %v978_v63, %s1605_s15 }
 0x5c8   : > { %v971_v2 = vmul.f32 %v1495_v54, %v970_v14 }
 0x5ca   : > { %v975_v5 = vsel %vm974_vm7, %v1495_v54, %v971_v2 }
 0x5cb   : > { %v977_v6 = vmul.f32 %v975_v5, %v1868_v33  ;;  %v629_v5 = vmul.f32 %v1951_v26, %v1951_v26 }
 0x5cd   : > { %v979_v7 = vmul.f32 %v977_v6, %v939_v43  ;;  %1466 = vset.pattern.permute.xlu0 %v1606_v21 }
 0x5cf   : > { %997 = vperm.xlu2 %1465, %v977_v6   ;;  %984 = vrot.lane.b32.xlu1 %v979_v7, %s1605_s15 }
 0x621   : > { %v983_v1 = vpop.permute.xlu2 %982 }
 0x622   : > { %v988_v8 = vsub.f32 %v1861_v24, %v983_v1 }
 0x624   : > { %1004 = vperm.xlu0 %1466, %v988_v8  }
 0x629   : > { %v998_v51 = vpop.permute.xlu2 %997 }
 0x62a   : > { %v1001_v19 = vmul.f32 %v998_v51, %v1958_v29 }
 0x62c   : > { %1468 = vset.pattern.permute.xlu0 %v1604_v28 }
 0x637   : > { %v993_v13 = vpop.permute.xlu0 %992 }
 0x638   : > { %v1000_v17 = vmul.f32 %v993_v13, %v1953_v25 }
 0x641   : > { %v985_v9 = vpop.permute.xlu1 %984 }
 0x642   : > { %v989_v10 = vsub.f32 %v1868_v33, %v985_v9 }
 0x644   : > { %1009 = vperm.xlu1 %1464, %v989_v10  }
 0x64c   : > { %1467 = vset.pattern.permute.xlu1 %v1604_v28 }
 0x64d   : > { %1056 = vrot.lane.b32.xlu1 %v1363_v16, %s1607_s16 }
 0x696   : > { %v1005_v18 = vpop.permute.xlu0 %1004 }
 0x697   : > { %v1012_v53 = vadd.f32 %v1005_v18, %v1000_v17 }
 0x699   : > { %v1014_v24 = vmax.f32 %v1012_v53, 0.0 }
 0x69b   : > { %v1021_v56 = vpack.c.bf16 %v1014_v24, %v1014_v24 }
 0x69d   : > { %1023 = vst [vmem:[#allocation2 + $0x1c] sm:$0xf] %v1021_v56 }
 0x6a4   : > { %v1358_v23 = vld [vmem:[#allocation2 + $0x1c] sm:$0xf] }
 0x6a5   : > { %v1354_v25 = vld [vmem:[#allocation2 + $0x1c] sm:$0xf] }
 0x6a6   : > { %v1392_v42 = vld [vmem:[#allocation2 + $0x1c] sm:$0xf] }
 0x6b6   : > { %v1010_v33 = vpop.permute.xlu1 %1009 }
 0x6b7   : > { %v1013_v20 = vadd.f32 %v1010_v33, %v1001_v19 }
 0x6b9   : > { %v1015_v22 = vmax.f32 %v1013_v20, 0.0 }
 0x6bb   : > { %v1022_v28 = vpack.c.bf16 %v1015_v22, %v1015_v22 }
 0x6bd   : > { %1024 = vst [vmem:[#allocation2 + $0x28] sm:$0xf] %v1022_v28 }
 0x6bf   : > { %v1057_v32 = vpop.permute.xlu1 %1056 }
 0x6c4   : > { %v1396_v27 = vld [vmem:[#allocation2 + $0x24] sm:$0xf0] }
 0x6c5   : > { %v1359_v30 = vor.u32 %v1396_v27, %v1358_v23  ;;  %v1394_v52 = vld [vmem:[#allocation2 + $0x24] sm:$0xf0] }
 0x6c6   : > { %v1355_v31 = vor.u32 %v1394_v52, %v1354_v25  ;;  %v1348_v38 = vld [vmem:[#allocation2 + $0x24] sm:$0xf0] }
 0x6c7   : > { %1054 = vrot.lane.b32.xlu2 %v1359_v30, %s1607_s16  ;;  %v1351_v44 = vor.u32 %v1392_v42, %v1348_v38 }
 0x6cf   : > { %1044 = vrot.lane.b32.xlu2 %v1355_v31, %s1608_s17 }
 0x721   : > { %v1055_v34 = vpop.permute.xlu2 %1054 }
 0x722   : > { %1065 = vrot.lane.b32.xlu0 %v1055_v34, %s1605_s15  ;;  %v1058_v29 = vsel %vm581_vm0, %v1055_v34, %v1057_v32 }
 0x723   : > { %1067 = vrot.lane.b32.xlu1 %v1058_v29, %s1605_s15 }
 0x729   : > { %v1045_v43 = vpop.permute.xlu2 %1044 }
 0x72a   : > { %1059 = vrot.lane.b32.xlu0 %v1347_v37, %s1605_s15  ;;  %1063 = vrot.lane.b32.xlu2 %v1045_v43, %s1605_s15 }
 0x72b   : > { %1061 = vrot.lane.b32.xlu1 %v1351_v44, %s1605_s15 }
 0x753   : > { %622 = vadd.xlane.f32.xlu2 %v1949_v55 }
 0x754   : > { %624 = vadd.xlane.f32.xlu0 %v1951_v26 }
 0x75c   : > { %630 = vadd.xlane.f32.xlu0 %v628_v45 }
 0x784   : > { %v1064_v0 = vpop.permute.xlu2 %1063 }
 0x794   : > { %v1066_v47 = vpop.permute.xlu0 %1065 }
 0x795   : > { %v1068_v49 = vpop.permute.xlu1 %1067 }
 0x796   : > { %v1070_v50 = vsel %vm598_vm1, %v1066_v47, %v1068_v49 }
 0x797   : > { %1079 = vmatpush.bf16.msrb.mxu0 %v1070_v50 }
 0x79b   : > { %1080 = vmatpush.bf16.msrb.mxu0 %v1064_v0 }
 0x79c   : > { %v1060_v3 = vpop.permute.xlu0 %1059 }
 0x79d   : > { %v1062_v4 = vpop.permute.xlu1 %1061 }
 0x79e   : > { %v1069_v58 = vsel %vm598_vm1, %v1060_v3, %v1062_v4  ;;  %v256_v4 = vld [vmem:[%s2103_s4 + $0x38] sm:$0xff] }
 0x79f   : > { %1081 = vmatpush.bf16.msrb.mxu0 %v1069_v58 }
 0x7a2   : > { %1364 = vmatmul.msk.bf16.vlgmr.msrb.gmra.mxu0 %vm604_vm2, %v1939_v11 }
 0x7c6   : > { %v623_v39 = vpop.xlane.xlu2 %622 }
 0x7c7   : > { %v625_v48 = vpop.xlane.xlu0 %624  ;;  %v626_v61 = vmul.f32 0.0078125, %v623_v39 }
 0x7c8   : > { %v627_v18 = vmul.f32 0.0078125, %v625_v48 }
 0x7c9   : > { %v636_v59 = vmul.f32 %v626_v61, %v626_v61 }
 0x7ca   : > { %v637_v56 = vmul.f32 %v627_v18, %v627_v18 }
 0x7cf   : > { %v631_v54 = vpop.xlane.xlu0 %630 }
 0x7d0   : > { %v634_v41 = vmul.f32 0.0078125, %v631_v54 }
 0x7d2   : > { %v638_v60 = vsub.f32 %v634_v41, %v636_v59 }
 0x7d4   : > { %v640_v62 = vmax.f32 %v638_v60, 0.0 }
 0x7d6   : > { %v642_v57 = vadd.f32 1e-05, %v640_v62 }
 0x7d8   : > { %1496 = vrsqrt.f32 %v642_v57  ;;  %vm650_vm9 = vweird.f32 %v642_v57 }
 0x7de   : > { %v1497_v14 = vpop.eup %1496 }
 0x7df   : > { %v645_v2 = vmul.f32 %v1497_v14, %v642_v57  ;;  %vm651_vm8 = vweird.f32 %v1497_v14 }
 0x7e0   : > { %vm652_vm10 = vmor %vm650_vm9, %vm651_vm8 }
 0x7e1   : > { %v646_v6 = vmul.f32 %v1497_v14, %v645_v2 }
 0x7e3   : > { %v647_v1 = vmul.f32 0.5, %v646_v6 }
 0x7e5   : > { %v648_v9 = vsub.f32 1.5, %v647_v1 }
 0x7e7   : > { %v649_v10 = vmul.f32 %v1497_v14, %v648_v9 }
 0x7e9   : > { %v653_v15 = vsel %vm652_vm10, %v1497_v14, %v649_v10 }
 0x7ea   : > { %v2009_v16 = vmul.f32 %v653_v15, %v2006_v12 }
 0x7ec   : > { %v666_v13 = vmul.f32 %v2009_v16, %v626_v61 }
 0x81f   : > { %v1991_v63 = vpop.f32.mrf.mxu0 }
 0x820   : > { %1088 = vadd.xlane.f32.xlu1 %v1991_v63  ;;  %v1094_v8 = vmul.f32 %v1991_v63, %v1991_v63 }
 0x827   : > { %v1996_v11 = vpop.f32.mrf.mxu0 }
 0x828   : > { %632 = vadd.xlane.f32.xlu1 %v629_v5  ;;  %1090 = vadd.xlane.f32.xlu2 %v1996_v11  ;;  %v1095_v7 = vmul.f32 %v1996_v11, %v1996_v11 }
 0x82a   : > { %1098 = vadd.xlane.f32.xlu0 %v1095_v7 }
 0x830   : > { %1096 = vadd.xlane.f32.xlu2 %v1094_v8 }
 0x841   : > { %670 = vrot.lane.b32.xlu1 %v666_v13, %s1605_s15 }
 0x893   : > { %v1089_v17 = vpop.xlane.xlu1 %1088 }
 0x894   : > { %v1092_v23 = vmul.f32 0.0078125, %v1089_v17 }
 0x896   : > { %v1102_v32 = vmul.f32 %v1092_v23, %v1092_v23 }
 0x89b   : > { %v633_v53 = vpop.xlane.xlu1 %632  ;;  %v1091_v24 = vpop.xlane.xlu2 %1090 }
 0x89c   : > { %v635_v51 = vmul.f32 0.0078125, %v633_v53  ;;  %v2013_v19 = vmul.f32 0.0078125, %v1091_v24 }
 0x89d   : > { %v1099_v33 = vpop.xlane.xlu0 %1098 }
 0x89e   : > { %v639_v20 = vsub.f32 %v635_v51, %v637_v56  ;;  %v1103_v22 = vmul.f32 %v2013_v19, %v2013_v19  ;;  %v1101_v28 = vmul.f32 0.0078125, %v1099_v33 }
 0x8a0   : > { %v641_v27 = vmax.f32 %v639_v20, 0.0  ;;  %v1105_v30 = vsub.f32 %v1101_v28, %v1103_v22 }
 0x8a2   : > { %v643_v52 = vadd.f32 1e-05, %v641_v27  ;;  %v1107_v25 = vmax.f32 %v1105_v30, 0.0 }
 0x8a3   : > { %v1097_v31 = vpop.xlane.xlu2 %1096 }
 0x8a4   : > { %1498 = vrsqrt.f32 %v643_v52  ;;  %v1109_v34 = vadd.f32 1e-05, %v1107_v25  ;;  %v1100_v29 = vmul.f32 0.0078125, %v1097_v31  ;;  %vm660_vm13 = vweird.f32 %v643_v52 }
 0x8a6   : > { %1500 = vrsqrt.f32 %v1109_v34  ;;  %v1104_v35 = vsub.f32 %v1100_v29, %v1102_v32  ;;  %vm1126_vm12 = vweird.f32 %v1109_v34 }
 0x8a8   : > { %v1106_v36 = vmax.f32 %v1104_v35, 0.0 }
 0x8aa   : > { %v1499_v37 = vpop.eup %1498  ;;  %v1108_v38 = vadd.f32 1e-05, %v1106_v36 }
 0x8ab   : > { %v655_v42 = vmul.f32 %v1499_v37, %v643_v52  ;;  %vm661_vm11 = vweird.f32 %v1499_v37 }
 0x8ac   : > { %v1501_v43 = vpop.eup %1500  ;;  %1502 = vrsqrt.f32 %v1108_v38  ;;  %vm662_vm14 = vmor %vm660_vm13, %vm661_vm11  ;;  %vm1116_vm0 = vweird.f32 %v1108_v38 }
 0x8ad   : > { %v656_v44 = vmul.f32 %v1499_v37, %v655_v42  ;;  %v1121_v45 = vmul.f32 %v1501_v43, %v1109_v34  ;;  %vm1127_vm2 = vweird.f32 %v1501_v43 }
 0x8ae   : > { %vm1128_vm3 = vmor %vm1126_vm12, %vm1127_vm2 }
 0x8af   : > { %v657_v47 = vmul.f32 0.5, %v656_v44  ;;  %v1122_v50 = vmul.f32 %v1501_v43, %v1121_v45 }
 0x8b1   : > { %v658_v49 = vsub.f32 1.5, %v657_v47  ;;  %v1123_v48 = vmul.f32 0.5, %v1122_v50  ;;  %v707_v47 = vld [vmem:[%s1733_s25 + $0x10] sm:$0xff]  ;;  %v708_v50 = vld [vmem:[%s1733_s25 + $0x18] sm:$0xff] }
 0x8b2   : > { %v1503_v0 = vpop.eup %1502 }
 0x8b3   : > { %v1111_v3 = vmul.f32 %v1503_v0, %v1108_v38  ;;  %v659_v58 = vmul.f32 %v1499_v37, %v658_v49  ;;  %v1124_v60 = vsub.f32 1.5, %v1123_v48  ;;  %vm1117_vm15 = vweird.f32 %v1503_v0  ;;  %v671_v14 = vpop.permute.xlu1 %670  ;;  %v705_v38 = vld [vmem:[%s1733_s25] sm:$0xff] }
 0x8b4   : > { %vm1118_vm1 = vmor %vm1116_vm0, %vm1117_vm15  ;;  %v676_v7 = vsub.f32 %v2006_v12, %v671_v14 }
 0x8b5   : > { %v1112_v39 = vmul.f32 %v1503_v0, %v1111_v3  ;;  %v663_v54 = vsel %vm662_vm14, %v1499_v37, %v659_v58  ;;  %v1125_v5 = vmul.f32 %v1501_v43, %v1124_v60 }
 0x8b6   : > { %v665_v61 = vmul.f32 %v663_v54, %v256_v4  ;;  %v1367_v54 = vld [vmem:[%s1733_s25 + $0x30] sm:$0xff] }
 0x8b7   : > { %v1113_v41 = vmul.f32 0.5, %v1112_v39  ;;  %v1129_v8 = vsel %vm1128_vm3, %v1501_v43, %v1125_v5 }
 0x8b8   : > { %685 = vperm.xlu1 %1467, %v665_v61   ;;  %v667_v59 = vmul.f32 %v665_v61, %v627_v18  ;;  %v1131_v9 = vmul.f32 %v1129_v8, %v256_v4 }
 0x8b9   : > { %v1114_v62 = vsub.f32 1.5, %v1113_v41 }
 0x8ba   : > { %672 = vrot.lane.b32.xlu2 %v667_v59, %s1605_s15  ;;  %v1133_v10 = vmul.f32 %v1131_v9, %v2013_v19 }
 0x8bb   : > { %v1115_v57 = vmul.f32 %v1503_v0, %v1114_v62 }
 0x8bd   : > { %v1119_v2 = vsel %vm1118_vm1, %v1503_v0, %v1115_v57 }
 0x8be   : > { %v1130_v6 = vmul.f32 %v1119_v2, %v2006_v12 }
 0x8c0   : > { %1469 = vset.pattern.permute.xlu1 %v1606_v21  ;;  %v1132_v1 = vmul.f32 %v1130_v6, %v1092_v23 }
 0x8c1   : > { %692 = vperm.xlu1 %1469, %v676_v7  }
 0x8c2   : > { %680 = vperm.xlu2 %1465, %v2009_v16   ;;  %1136 = vrot.lane.b32.xlu0 %v1132_v1, %s1605_s15 }
 0x8ca   : > { %1151 = vperm.xlu2 %1465, %v1131_v9   ;;  %1138 = vrot.lane.b32.xlu0 %v1133_v10, %s1605_s15 }
 0x8d2   : > { %1146 = vperm.xlu0 %1468, %v1130_v6   ;;  %1470 = vset.pattern.permute.xlu2 %v1606_v21 }
 0x8da   : > { %1471 = vset.pattern.permute.xlu0 %v1606_v21 }
 0x914   : > { %v673_v15 = vpop.permute.xlu2 %672 }
 0x915   : > { %v677_v13 = vsub.f32 %v256_v4, %v673_v15 }
 0x917   : > { %697 = vperm.xlu2 %1470, %v677_v13  }
 0x91c   : > { %v681_v24 = vpop.permute.xlu2 %680 }
 0x91d   : > { %v688_v33 = vmul.f32 %v681_v24, %v1949_v55  ;;  %v1386_v55 = vld [vmem:[%s2102_s3 + $0x8] sm:$0xff] }
 0x924   : > { %v1152_v51 = vpop.permute.xlu2 %1151 }
 0x925   : > { %v1155_v31 = vmul.f32 %v1152_v51, %v1996_v11 }
 0x92a   : > { %v686_v56 = vpop.permute.xlu1 %685 }
 0x92b   : > { %v689_v20 = vmul.f32 %v686_v56, %v1951_v26 }
 0x933   : > { %v693_v19 = vpop.permute.xlu1 %692 }
 0x934   : > { %v1137_v17 = vpop.permute.xlu0 %1136  ;;  %v700_v22 = vadd.f32 %v693_v19, %v688_v33 }
 0x935   : > { %v1142_v18 = vsub.f32 %v2006_v12, %v1137_v17  ;;  %v1385_v12 = vld [vmem:[%s2102_s3] sm:$0xff] }
 0x936   : > { %v702_v23 = vmax.f32 %v700_v22, 0.0 }
 0x937   : > { %1158 = vperm.xlu1 %1469, %v1142_v18  }
 0x93c   : > { %v1139_v16 = vpop.permute.xlu0 %1138 }
 0x93d   : > { %v1143_v53 = vsub.f32 %v256_v4, %v1139_v16 }
 0x93f   : > { %1163 = vperm.xlu0 %1471, %v1143_v53  }
 0x944   : > { %v1147_v26 = vpop.permute.xlu0 %1146 }
 0x945   : > { %v1154_v25 = vmul.f32 %v1147_v26, %v1991_v63  ;;  %v706_v63 = vld [vmem:[%s1733_s25 + $0x8] sm:$0xff] }
 0x971   : > { %v698_v21 = vpop.permute.xlu2 %697 }
 0x972   : > { %v701_v28 = vadd.f32 %v698_v21, %v689_v20 }
 0x974   : > { %v703_v27 = vmax.f32 %v701_v28, 0.0 }
 0x976   : > { %v704_v30 = vpack.c.bf16 %v703_v27, %v702_v23 }
 0x978   : > { %733 = vmatpush.bf16.msra.mxu2 %v704_v30 }
 0x97b   : > { %1337 = vmatmul.msk.bf16.vlgmr.msra.gmra.mxu2 %vm719_vm4, %v1385_v12 }
 0x98b   : > { %1338 = vmatmul.msk.bf16.gmra.mxu2 %vm719_vm4, %v1386_v55 }
 0x9a9   : > { %v1159_v52 = vpop.permute.xlu1 %1158 }
 0x9aa   : > { %v1166_v32 = vadd.f32 %v1159_v52, %v1154_v25 }
 0x9ac   : > { %v1168_v35 = vmax.f32 %v1166_v32, 0.0 }
 0x9b1   : > { %v1164_v34 = vpop.permute.xlu0 %1163 }
 0x9b2   : > { %v1167_v29 = vadd.f32 %v1164_v34, %v1155_v31 }
 0x9b4   : > { %v1169_v36 = vmax.f32 %v1167_v29, 0.0 }
 0x9b6   : > { %v1170_v37 = vpack.c.bf16 %v1169_v36, %v1168_v35 }
 0x9b8   : > { %1182 = vmatpush.bf16.msra.mxu3 %v1170_v37 }
 0x9bb   : > { %1369 = vmatmul.msk.bf16.vlgmr.msra.gmra.mxu3 %vm719_vm4, %v1385_v12 }
 0x9cb   : > { %1370 = vmatmul.msk.bf16.gmra.mxu3 %vm719_vm4, %v1386_v55 }
 0x9fe   : > { %v735_v42 = vpop.f32.mrf.mxu2 }
 0x9ff   : > { %v736_v43 = vadd.f32 %v735_v42, %v705_v38 }
 0xa01   : > { %745 = vst [vmem:[%s2048_s13] sm:$0xff] %v736_v43 }
 0xa06   : > { %v737_v11 = vpop.f32.mrf.mxu2 }
 0xa07   : > { %v738_v44 = vadd.f32 %v737_v11, %v706_v63 }
 0xa09   : > { %746 = vst [vmem:[%s2048_s13 + $0x8] sm:$0xff] %v738_v44 }
 0xa0e   : > { %v740_v45 = vpop.f32.mrf.mxu2 }
 0xa0f   : > { %v741_v49 = vadd.f32 %v740_v45, %v707_v47 }
 0xa11   : > { %747 = vst [vmem:[%s2048_s13 + $0x10] sm:$0xff] %v741_v49 }
 0xa16   : > { %v742_v0 = vpop.f32.mrf.mxu2 }
 0xa17   : > { %v743_v3 = vadd.f32 %v742_v0, %v708_v50 }
 0xa19   : > { %748 = vst [vmem:[%s2048_s13 + $0x18] sm:$0xff] %v743_v3 }
 0xa3e   : > { %v1184_v4 = vpop.f32.mrf.mxu3 }
 0xa3f   : > { %v1185_v58 = vadd.f32 %v1886_v46, %v1184_v4  ;;  %v1368_v46 = vld [vmem:[%s1733_s25 + $0x38] sm:$0xff] }
 0xa41   : > { %1371 = vst [vmem:[%s2048_s13 + $0x20] sm:$0xff] %v1185_v58 }
 0xa46   : > { %v1186_v48 = vpop.f32.mrf.mxu3 }
 0xa47   : > { %v1187_v39 = vadd.f32 %v1878_v40, %v1186_v48 }
 0xa49   : > { %1372 = vst [vmem:[%s2048_s13 + $0x28] sm:$0xff] %v1187_v39 }
 0xa4e   : > { %v1189_v61 = vpop.f32.mrf.mxu3 }
 0xa4f   : > { %v1190_v41 = vadd.f32 %v1367_v54, %v1189_v61 }
 0xa51   : > { %1373 = vst [vmem:[%s2048_s13 + $0x30] sm:$0xff] %v1190_v41 }
 0xa56   : > { %v1191_v59 = vpop.f32.mrf.mxu3 }
 0xa57   : > { %v1192_v60 = vadd.f32 %v1368_v46, %v1191_v59 }
 0xa59   : > { %1374 = vst [vmem:[%s2048_s13 + $0x38] sm:$0xff] %v1192_v60 }
 0xa5a   : > { %1561 = shalt.err (!%p1558_p4)
}
 0xa5b   : > { %s1609_s12 = smov 128   ;;  %s1610_s25 = smov 8  }
 0xa5c   : > { %1401 = dma.vmem_to_hbm [thread:$0]  (%p1691_p11), %s1214_s8, 1024, %s1216_s28, %s1200_s9, %s1609_s12, %s1609_s12, %s1610_s25  }
 0xa5d PF: > { %s1230_s13 = sand.u32 1, %s1588_s18   ;;  %p2110_p7 = scmp.ge.s32.totalorder %s1600_s21, 2 }
 0xa5e   : > { %s1231_s14 = scalar_lea.sflag [#allocation5], %s1230_s13 }
 0xa5f   : > { %p1408_p5 = pnand %p2110_p7, %p1695_p12 }
 0xa61   : > { %p1409_p8 = pneg %p1408_p5 }
 0xa63   : > { %1583 = dma.done.wait (%p1409_p8), %s1231_s14, 1024  }
 0xa64   : > { %1585 = vsyncadd (%p1409_p8), %s1231_s14, 4294966272  ;;  %p18_p10 = scmp.ge.s32.totalorder %s1666_s24, 4   ;;  %s2111_s18 = smov %s1592_s19 }
 0xa65   : > { %s2112_s19 = smov %s1596_s20  ;;  %s2113_s20 = smov %s1678_s27 }
 0xa66   : > { %s2114_s21 = smov %s1666_s24  ;;  %20 = sbr.rel (!%p18_p10) target bundleno = 5 (0x5), region = 88 }
 0xa6b   :  { %1237 = vsyncpa [#allocation4], 1 }
 0xa6c   :  { %1239 = vsyncpa [#allocation4 + $0x1], 1 }
 0xa6d   :  { %1240 = vsyncpa [#allocation5], 1 }
 0xa6e   :  { %1242 = vsyncpa [#allocation5 + $0x1], 1 }

</bundles_post_ra>
